<compile_context>
chip_gen: v7x
topology: tpu7x:2x2x1
jax: 0.10.0
libtpu: 0.0.40
codegen_flags: <defaults>
</compile_context>

<pallas_src>
import jax
import jax.numpy as jnp
from jax.experimental import pallas as pl
from jax.experimental.pallas import tpu as pltpu


def _rnn_chunk_kernel(x_ref, wih_ref, whh_ref, b_ref, out_ref, hN_ref, h_sc):
    """One (batch-block, time-chunk) grid step of the fused RNN forward.

    x_ref  : (BB, TC, Din)  batch-first input chunk
    wih_ref: (Din, H)       W_ih^T
    whh_ref: (H, H)         W_hh^T
    b_ref  : (1, H)         b_ih + b_hh
    out_ref: (BB, TC, H)    hidden states of this chunk (batch-first)
    hN_ref : (BB, H)        final hidden state (resident across the chunk axis)
    h_sc   : (BB, H)        carried hidden state, persists across chunks
    """
    c = pl.program_id(1)

    @pl.when(c == 0)
    def _init():
        h_sc[...] = jnp.zeros_like(h_sc)

    BB, TC, Din = x_ref.shape
    H = whh_ref.shape[1]

    # Hoisted input projection for the whole chunk: one (BB*TC, Din) x (Din, H)
    # MXU matmul with the combined bias folded in once (leading-dim collapse /
    # split reshapes keep the lane dim untouched).
    x2d = x_ref[...].reshape(BB * TC, Din)
    xp = (jnp.dot(x2d, wih_ref[...], preferred_element_type=jnp.float32)
          + b_ref[...]).reshape(BB, TC, H)

    whh = whh_ref[...]
    h = h_sc[...]

    # Serial recurrence over the chunk.  TC is a small static constant
    # (bounded by the chunk picker), so a static unroll keeps all ref indices
    # static and gives the LLO scheduler full visibility.
    for t in range(TC):
        h = jnp.tanh(xp[:, t, :] +
                     jnp.dot(h, whh, preferred_element_type=jnp.float32))
        out_ref[:, t, :] = h.astype(out_ref.dtype)

    h_sc[...] = h
    # hN is a resident output across the chunk axis: the last write wins and
    # is flushed to HBM when the batch block changes / the grid ends.
    hN_ref[...] = h.astype(hN_ref.dtype)


def _pick_tile(n, max_tile):
    """Largest tile <= max_tile that divides n and is a multiple of 8,
    falling back to the full axis (always a legal block)."""
    if n <= max_tile:
        return n
    for t in range(max_tile, 7, -1):
        if t % 8 == 0 and n % t == 0:
            return t
    return n


def encoder1_forward(x, params):
    """Mirror of Encoder1.forward (eval mode).

    x: (B, T, input_size), batch-first like the PyTorch module.
    Returns (encode_outputs (B, T, H), encode_hidden (B, H)).
    """
    B, T, Din = x.shape
    H = params["w_hh"].shape[0]

    wih_t = jnp.transpose(params["w_ih"])                  # (Din, H)  (tiny)
    whh_t = jnp.transpose(params["w_hh"])                  # (H, H)    (tiny)
    b = (params["b_ih"] + params["b_hh"]).reshape(1, H)    # (1, H)

    BB = _pick_tile(B, 8)    # batch block: 8 sublanes per core when possible
    TC = _pick_tile(T, 64)   # time chunk: bounds VMEM + unroll length
    grid = (B // BB, T // TC)

    out, hN = pl.pallas_call(
        _rnn_chunk_kernel,
        out_shape=(
            jax.ShapeDtypeStruct((B, T, H), x.dtype),   # all hidden states
            jax.ShapeDtypeStruct((B, H), x.dtype),      # final hidden
        ),
        grid=grid,
        in_specs=[
            pl.BlockSpec((BB, TC, Din), lambda bi, c: (bi, c, 0)),  # x chunk
            pl.BlockSpec((Din, H), lambda bi, c: (0, 0)),           # W_ih^T
            pl.BlockSpec((H, H), lambda bi, c: (0, 0)),             # W_hh^T
            pl.BlockSpec((1, H), lambda bi, c: (0, 0)),             # bias
        ],
        out_specs=(
            pl.BlockSpec((BB, TC, H), lambda bi, c: (bi, c, 0)),    # outputs
            pl.BlockSpec((BB, H), lambda bi, c: (bi, 0)),           # hN
        ),
        scratch_shapes=[
            pltpu.VMEM((BB, H), jnp.float32),       # carried hidden state
        ],
        compiler_params=pltpu.CompilerParams(
            # batch blocks are independent -> megacore-parallel on v7x;
            # the time-chunk axis carries state -> "arbitrary" (sequential).
            dimension_semantics=("parallel", "arbitrary"),
            # Chunk sizing keeps per-step VMEM in the tens of KiB; 32 MiB is
            # within the scoped limit on v5e/v6e/v7x.
            vmem_limit_bytes=32 * 1024 * 1024,
        ),
    )(x, wih_t, whh_t, b)

    return out, hN


def init_params(key, input_size, hidden_size):
    """Match PyTorch nn.RNN default init U(-1/sqrt(H), 1/sqrt(H))."""
    bound = 1.0 / float(hidden_size) ** 0.5
    k1, k2, k3, k4 = jax.random.split(key, 4)
    return {
        "w_ih": jax.random.uniform(k1, (hidden_size, input_size),
                                   jnp.float32, -bound, bound),
        "w_hh": jax.random.uniform(k2, (hidden_size, hidden_size),
                                   jnp.float32, -bound, bound),
        "b_ih": jax.random.uniform(k3, (hidden_size,),
                                   jnp.float32, -bound, bound),
        "b_hh": jax.random.uniform(k4, (hidden_size,),
                                   jnp.float32, -bound, bound),
    }


# ---- pure-JAX reference (lax.scan) for correctness checking ----
def encoder1_reference(x, params):
    B, T, _ = x.shape
    H = params["w_hh"].shape[0]
    x_tm = jnp.transpose(x, (1, 0, 2))

    def step(h, xt):
        h_new = jnp.tanh(xt @ params["w_ih"].T + params["b_ih"]
                         + h @ params["w_hh"].T + params["b_hh"])
        return h_new, h_new

    h0 = jnp.zeros((B, H), x.dtype)
    hN, ys = jax.lax.scan(step, h0, x_tm)
    return jnp.transpose(ys, (1, 0, 2)), hN


if __name__ == "__main__":
    # B=16 / T=16 exercise both the batch-parallel axis (2 blocks of 8) and
    # the chunk-carried hidden state (2 time chunks of 8).
    B, T, INPUT_SIZE, HIDDEN_SIZE = 16, 16, 16, 32

    key = jax.random.PRNGKey(0)
    k_params, k_x = jax.random.split(key)
    params = init_params(k_params, INPUT_SIZE, HIDDEN_SIZE)
    x = jax.random.normal(k_x, (B, T, INPUT_SIZE), jnp.float32)

    out, hN = encoder1_forward(x, params)
    jax.block_until_ready((out, hN))

    ref_out, ref_h = encoder1_reference(x, params)
    assert out.shape == (B, T, HIDDEN_SIZE)
    assert hN.shape == (B, HIDDEN_SIZE)
    assert jnp.allclose(out, ref_out, atol=1e-5, rtol=1e-5), \
        float(jnp.max(jnp.abs(out - ref_out)))
    assert jnp.allclose(hN, ref_h, atol=1e-5, rtol=1e-5), \
        float(jnp.max(jnp.abs(hN - ref_h)))

    print("KERNEL_OK")
</pallas_src>

<mosaic_0001>
module attributes {stable_mosaic.version = 11 : i64} {
  func.func @_rnn_chunk_kernel(%arg0: i32, %arg1: i32, %arg2: memref<8x16x16xf32, #tpu.memory_space<vmem>>, %arg3: memref<16x32xf32, #tpu.memory_space<vmem>>, %arg4: memref<32x32xf32, #tpu.memory_space<vmem>>, %arg5: memref<1x32xf32, #tpu.memory_space<vmem>>, %arg6: memref<8x16x32xf32, #tpu.memory_space<vmem>>, %arg7: memref<8x32xf32, #tpu.memory_space<vmem>>, %arg8: memref<8x32xf32, #tpu.memory_space<vmem>>) attributes {dimension_semantics = [#tpu.dimension_semantics<parallel>, #tpu.dimension_semantics<arbitrary>], iteration_bounds = array<i64: 2, 1>, scalar_prefetch = 0 : i64, scratch_operands = 1 : i64, tpu.core_type = #tpu.core_type<tc>, window_params = [{transform_indices = @transform_0, window_bounds = array<i64: 8, 16, 16>}, {pipeline_mode = #tpu.pipeline_mode<synchronous>, transform_indices = @transform_1, window_bounds = array<i64: 16, 32>}, {pipeline_mode = #tpu.pipeline_mode<synchronous>, transform_indices = @transform_2, window_bounds = array<i64: 32, 32>}, {pipeline_mode = #tpu.pipeline_mode<synchronous>, transform_indices = @transform_3, window_bounds = array<i64: 1, 32>}, {transform_indices = @transform_4, window_bounds = array<i64: 8, 16, 32>}, {transform_indices = @transform_5, window_bounds = array<i64: 8, 32>}]} {
    %c0_i32 = arith.constant 0 : i32
    %0 = arith.cmpi eq, %arg1, %c0_i32 : i32
    %1 = arith.extui %0 : i1 to i32
    %c0_i32_0 = arith.constant 0 : i32
    %2 = arith.cmpi ne, %1, %c0_i32_0 : i32
    scf.if %2 {
      %cst_64 = arith.constant 0.000000e+00 : f32
      %143 = vector.broadcast %cst_64 : f32 to vector<8x32xf32>
      %c0_65 = arith.constant 0 : index
      %c0_66 = arith.constant 0 : index
      %144 = vector.load %arg8[%c0_65, %c0_66] : memref<8x32xf32, #tpu.memory_space<vmem>>, vector<8x32xf32>
      tpu.vector_store %arg8[%c0_65, %c0_66], %143 {strides = array<i32>} : memref<8x32xf32, #tpu.memory_space<vmem>>, vector<8x32xf32>,
    } else {
    }
    %c0 = arith.constant 0 : index
    %c0_1 = arith.constant 0 : index
    %c0_2 = arith.constant 0 : index
    %3 = vector.load %arg2[%c0, %c0_1, %c0_2] : memref<8x16x16xf32, #tpu.memory_space<vmem>>, vector<8x16x16xf32>
    %4 = vector.shape_cast %3 : vector<8x16x16xf32> to vector<128x16xf32>
    %c0_3 = arith.constant 0 : index
    %c0_4 = arith.constant 0 : index
    %5 = vector.load %arg3[%c0_3, %c0_4] : memref<16x32xf32, #tpu.memory_space<vmem>>, vector<16x32xf32>
    %cst = arith.constant dense<0.000000e+00> : vector<128x32xf32>
    %6 = tpu.matmul %4, %5, %cst {dimension_numbers = #tpu.dot_dimension_numbers<[1], [0], [0], [1], [0, 0, 1, 1], [], []>} : vector<128x16xf32>, vector<16x32xf32>, vector<128x32xf32> -> vector<128x32xf32>
    %c0_5 = arith.constant 0 : index
    %c0_6 = arith.constant 0 : index
    %7 = vector.load %arg5[%c0_5, %c0_6] : memref<1x32xf32, #tpu.memory_space<vmem>>, vector<1x32xf32>
    %8 = vector.broadcast %7 : vector<1x32xf32> to vector<128x32xf32>
    %9 = arith.addf %6, %8 : vector<128x32xf32>
    %10 = vector.shape_cast %9 : vector<128x32xf32> to vector<8x16x32xf32>
    %c0_7 = arith.constant 0 : index
    %c0_8 = arith.constant 0 : index
    %11 = vector.load %arg4[%c0_7, %c0_8] : memref<32x32xf32, #tpu.memory_space<vmem>>, vector<32x32xf32>
    %c0_9 = arith.constant 0 : index
    %c0_10 = arith.constant 0 : index
    %12 = vector.load %arg8[%c0_9, %c0_10] : memref<8x32xf32, #tpu.memory_space<vmem>>, vector<8x32xf32>
    %13 = vector.extract_strided_slice %10 {offsets = [0, 0, 0], sizes = [8, 1, 32], strides = [1, 1, 1]} : vector<8x16x32xf32> to vector<8x1x32xf32>
    %14 = vector.shape_cast %13 : vector<8x1x32xf32> to vector<8x32xf32>
    %cst_11 = arith.constant dense<0.000000e+00> : vector<8x32xf32>
    %15 = tpu.matmul %12, %11, %cst_11 {dimension_numbers = #tpu.dot_dimension_numbers<[1], [0], [0], [1], [0, 0, 1, 1], [], []>} : vector<8x32xf32>, vector<32x32xf32>, vector<8x32xf32> -> vector<8x32xf32>
    %16 = arith.addf %14, %15 : vector<8x32xf32>
    %17 = math.tanh %16 : vector<8x32xf32>
    %c0_12 = arith.constant 0 : index
    %c0_13 = arith.constant 0 : index
    %c0_14 = arith.constant 0 : index
    %18 = vector.load %arg6[%c0_12, %c0_13, %c0_14] : memref<8x16x32xf32, #tpu.memory_space<vmem>>, vector<8x1x32xf32>
    %19 = vector.shape_cast %18 : vector<8x1x32xf32> to vector<8x32xf32>
    %20 = vector.shape_cast %17 : vector<8x32xf32> to vector<8x1x32xf32>
    tpu.vector_store %arg6[%c0_12, %c0_13, %c0_14], %20 {strides = array<i32>} : memref<8x16x32xf32, #tpu.memory_space<vmem>>, vector<8x1x32xf32>,
    %21 = vector.extract_strided_slice %10 {offsets = [0, 1, 0], sizes = [8, 1, 32], strides = [1, 1, 1]} : vector<8x16x32xf32> to vector<8x1x32xf32>
    %22 = vector.shape_cast %21 : vector<8x1x32xf32> to vector<8x32xf32>
    %cst_15 = arith.constant dense<0.000000e+00> : vector<8x32xf32>
    %23 = tpu.matmul %17, %11, %cst_15 {dimension_numbers = #tpu.dot_dimension_numbers<[1], [0], [0], [1], [0, 0, 1, 1], [], []>} : vector<8x32xf32>, vector<32x32xf32>, vector<8x32xf32> -> vector<8x32xf32>
    %24 = arith.addf %22, %23 : vector<8x32xf32>
    %25 = math.tanh %24 : vector<8x32xf32>
    %c0_16 = arith.constant 0 : index
    %c1 = arith.constant 1 : index
    %c0_17 = arith.constant 0 : index
    %26 = vector.load %arg6[%c0_16, %c1, %c0_17] : memref<8x16x32xf32, #tpu.memory_space<vmem>>, vector<8x1x32xf32>
    %27 = vector.shape_cast %26 : vector<8x1x32xf32> to vector<8x32xf32>
    %28 = vector.shape_cast %25 : vector<8x32xf32> to vector<8x1x32xf32>
    tpu.vector_store %arg6[%c0_16, %c1, %c0_17], %28 {strides = array<i32>} : memref<8x16x32xf32, #tpu.memory_space<vmem>>, vector<8x1x32xf32>,
    %29 = vector.extract_strided_slice %10 {offsets = [0, 2, 0], sizes = [8, 1, 32], strides = [1, 1, 1]} : vector<8x16x32xf32> to vector<8x1x32xf32>
    %30 = vector.shape_cast %29 : vector<8x1x32xf32> to vector<8x32xf32>
    %cst_18 = arith.constant dense<0.000000e+00> : vector<8x32xf32>
    %31 = tpu.matmul %25, %11, %cst_18 {dimension_numbers = #tpu.dot_dimension_numbers<[1], [0], [0], [1], [0, 0, 1, 1], [], []>} : vector<8x32xf32>, vector<32x32xf32>, vector<8x32xf32> -> vector<8x32xf32>
    %32 = arith.addf %30, %31 : vector<8x32xf32>
    %33 = math.tanh %32 : vector<8x32xf32>
    %c0_19 = arith.constant 0 : index
    %c2 = arith.constant 2 : index
    %c0_20 = arith.constant 0 : index
    %34 = vector.load %arg6[%c0_19, %c2, %c0_20] : memref<8x16x32xf32, #tpu.memory_space<vmem>>, vector<8x1x32xf32>
    %35 = vector.shape_cast %34 : vector<8x1x32xf32> to vector<8x32xf32>
    %36 = vector.shape_cast %33 : vector<8x32xf32> to vector<8x1x32xf32>
    tpu.vector_store %arg6[%c0_19, %c2, %c0_20], %36 {strides = array<i32>} : memref<8x16x32xf32, #tpu.memory_space<vmem>>, vector<8x1x32xf32>,
    %37 = vector.extract_strided_slice %10 {offsets = [0, 3, 0], sizes = [8, 1, 32], strides = [1, 1, 1]} : vector<8x16x32xf32> to vector<8x1x32xf32>
    %38 = vector.shape_cast %37 : vector<8x1x32xf32> to vector<8x32xf32>
    %cst_21 = arith.constant dense<0.000000e+00> : vector<8x32xf32>
    %39 = tpu.matmul %33, %11, %cst_21 {dimension_numbers = #tpu.dot_dimension_numbers<[1], [0], [0], [1], [0, 0, 1, 1], [], []>} : vector<8x32xf32>, vector<32x32xf32>, vector<8x32xf32> -> vector<8x32xf32>
    %40 = arith.addf %38, %39 : vector<8x32xf32>
    %41 = math.tanh %40 : vector<8x32xf32>
    %c0_22 = arith.constant 0 : index
    %c3 = arith.constant 3 : index
    %c0_23 = arith.constant 0 : index
    %42 = vector.load %arg6[%c0_22, %c3, %c0_23] : memref<8x16x32xf32, #tpu.memory_space<vmem>>, vector<8x1x32xf32>
    %43 = vector.shape_cast %42 : vector<8x1x32xf32> to vector<8x32xf32>
    %44 = vector.shape_cast %41 : vector<8x32xf32> to vector<8x1x32xf32>
    tpu.vector_store %arg6[%c0_22, %c3, %c0_23], %44 {strides = array<i32>} : memref<8x16x32xf32, #tpu.memory_space<vmem>>, vector<8x1x32xf32>,
    %45 = vector.extract_strided_slice %10 {offsets = [0, 4, 0], sizes = [8, 1, 32], strides = [1, 1, 1]} : vector<8x16x32xf32> to vector<8x1x32xf32>
    %46 = vector.shape_cast %45 : vector<8x1x32xf32> to vector<8x32xf32>
    %cst_24 = arith.constant dense<0.000000e+00> : vector<8x32xf32>
    %47 = tpu.matmul %41, %11, %cst_24 {dimension_numbers = #tpu.dot_dimension_numbers<[1], [0], [0], [1], [0, 0, 1, 1], [], []>} : vector<8x32xf32>, vector<32x32xf32>, vector<8x32xf32> -> vector<8x32xf32>
    %48 = arith.addf %46, %47 : vector<8x32xf32>
    %49 = math.tanh %48 : vector<8x32xf32>
    %c0_25 = arith.constant 0 : index
    %c4 = arith.constant 4 : index
    %c0_26 = arith.constant 0 : index
    %50 = vector.load %arg6[%c0_25, %c4, %c0_26] : memref<8x16x32xf32, #tpu.memory_space<vmem>>, vector<8x1x32xf32>
    %51 = vector.shape_cast %50 : vector<8x1x32xf32> to vector<8x32xf32>
    %52 = vector.shape_cast %49 : vector<8x32xf32> to vector<8x1x32xf32>
    tpu.vector_store %arg6[%c0_25, %c4, %c0_26], %52 {strides = array<i32>} : memref<8x16x32xf32, #tpu.memory_space<vmem>>, vector<8x1x32xf32>,
    %53 = vector.extract_strided_slice %10 {offsets = [0, 5, 0], sizes = [8, 1, 32], strides = [1, 1, 1]} : vector<8x16x32xf32> to vector<8x1x32xf32>
    %54 = vector.shape_cast %53 : vector<8x1x32xf32> to vector<8x32xf32>
    %cst_27 = arith.constant dense<0.000000e+00> : vector<8x32xf32>
    %55 = tpu.matmul %49, %11, %cst_27 {dimension_numbers = #tpu.dot_dimension_numbers<[1], [0], [0], [1], [0, 0, 1, 1], [], []>} : vector<8x32xf32>, vector<32x32xf32>, vector<8x32xf32> -> vector<8x32xf32>
    %56 = arith.addf %54, %55 : vector<8x32xf32>
    %57 = math.tanh %56 : vector<8x32xf32>
    %c0_28 = arith.constant 0 : index
    %c5 = arith.constant 5 : index
    %c0_29 = arith.constant 0 : index
    %58 = vector.load %arg6[%c0_28, %c5, %c0_29] : memref<8x16x32xf32, #tpu.memory_space<vmem>>, vector<8x1x32xf32>
    %59 = vector.shape_cast %58 : vector<8x1x32xf32> to vector<8x32xf32>
    %60 = vector.shape_cast %57 : vector<8x32xf32> to vector<8x1x32xf32>
    tpu.vector_store %arg6[%c0_28, %c5, %c0_29], %60 {strides = array<i32>} : memref<8x16x32xf32, #tpu.memory_space<vmem>>, vector<8x1x32xf32>,
    %61 = vector.extract_strided_slice %10 {offsets = [0, 6, 0], sizes = [8, 1, 32], strides = [1, 1, 1]} : vector<8x16x32xf32> to vector<8x1x32xf32>
    %62 = vector.shape_cast %61 : vector<8x1x32xf32> to vector<8x32xf32>
    %cst_30 = arith.constant dense<0.000000e+00> : vector<8x32xf32>
    %63 = tpu.matmul %57, %11, %cst_30 {dimension_numbers = #tpu.dot_dimension_numbers<[1], [0], [0], [1], [0, 0, 1, 1], [], []>} : vector<8x32xf32>, vector<32x32xf32>, vector<8x32xf32> -> vector<8x32xf32>
    %64 = arith.addf %62, %63 : vector<8x32xf32>
    %65 = math.tanh %64 : vector<8x32xf32>
    %c0_31 = arith.constant 0 : index
    %c6 = arith.constant 6 : index
    %c0_32 = arith.constant 0 : index
    %66 = vector.load %arg6[%c0_31, %c6, %c0_32] : memref<8x16x32xf32, #tpu.memory_space<vmem>>, vector<8x1x32xf32>
    %67 = vector.shape_cast %66 : vector<8x1x32xf32> to vector<8x32xf32>
    %68 = vector.shape_cast %65 : vector<8x32xf32> to vector<8x1x32xf32>
    tpu.vector_store %arg6[%c0_31, %c6, %c0_32], %68 {strides = array<i32>} : memref<8x16x32xf32, #tpu.memory_space<vmem>>, vector<8x1x32xf32>,
    %69 = vector.extract_strided_slice %10 {offsets = [0, 7, 0], sizes = [8, 1, 32], strides = [1, 1, 1]} : vector<8x16x32xf32> to vector<8x1x32xf32>
    %70 = vector.shape_cast %69 : vector<8x1x32xf32> to vector<8x32xf32>
    %cst_33 = arith.constant dense<0.000000e+00> : vector<8x32xf32>
    %71 = tpu.matmul %65, %11, %cst_33 {dimension_numbers = #tpu.dot_dimension_numbers<[1], [0], [0], [1], [0, 0, 1, 1], [], []>} : vector<8x32xf32>, vector<32x32xf32>, vector<8x32xf32> -> vector<8x32xf32>
    %72 = arith.addf %70, %71 : vector<8x32xf32>
    %73 = math.tanh %72 : vector<8x32xf32>
    %c0_34 = arith.constant 0 : index
    %c7 = arith.constant 7 : index
    %c0_35 = arith.constant 0 : index
    %74 = vector.load %arg6[%c0_34, %c7, %c0_35] : memref<8x16x32xf32, #tpu.memory_space<vmem>>, vector<8x1x32xf32>
    %75 = vector.shape_cast %74 : vector<8x1x32xf32> to vector<8x32xf32>
    %76 = vector.shape_cast %73 : vector<8x32xf32> to vector<8x1x32xf32>
    tpu.vector_store %arg6[%c0_34, %c7, %c0_35], %76 {strides = array<i32>} : memref<8x16x32xf32, #tpu.memory_space<vmem>>, vector<8x1x32xf32>,
    %77 = vector.extract_strided_slice %10 {offsets = [0, 8, 0], sizes = [8, 1, 32], strides = [1, 1, 1]} : vector<8x16x32xf32> to vector<8x1x32xf32>
    %78 = vector.shape_cast %77 : vector<8x1x32xf32> to vector<8x32xf32>
    %cst_36 = arith.constant dense<0.000000e+00> : vector<8x32xf32>
    %79 = tpu.matmul %73, %11, %cst_36 {dimension_numbers = #tpu.dot_dimension_numbers<[1], [0], [0], [1], [0, 0, 1, 1], [], []>} : vector<8x32xf32>, vector<32x32xf32>, vector<8x32xf32> -> vector<8x32xf32>
    %80 = arith.addf %78, %79 : vector<8x32xf32>
    %81 = math.tanh %80 : vector<8x32xf32>
    %c0_37 = arith.constant 0 : index
    %c8 = arith.constant 8 : index
    %c0_38 = arith.constant 0 : index
    %82 = vector.load %arg6[%c0_37, %c8, %c0_38] : memref<8x16x32xf32, #tpu.memory_space<vmem>>, vector<8x1x32xf32>
    %83 = vector.shape_cast %82 : vector<8x1x32xf32> to vector<8x32xf32>
    %84 = vector.shape_cast %81 : vector<8x32xf32> to vector<8x1x32xf32>
    tpu.vector_store %arg6[%c0_37, %c8, %c0_38], %84 {strides = array<i32>} : memref<8x16x32xf32, #tpu.memory_space<vmem>>, vector<8x1x32xf32>,
    %85 = vector.extract_strided_slice %10 {offsets = [0, 9, 0], sizes = [8, 1, 32], strides = [1, 1, 1]} : vector<8x16x32xf32> to vector<8x1x32xf32>
    %86 = vector.shape_cast %85 : vector<8x1x32xf32> to vector<8x32xf32>
    %cst_39 = arith.constant dense<0.000000e+00> : vector<8x32xf32>
    %87 = tpu.matmul %81, %11, %cst_39 {dimension_numbers = #tpu.dot_dimension_numbers<[1], [0], [0], [1], [0, 0, 1, 1], [], []>} : vector<8x32xf32>, vector<32x32xf32>, vector<8x32xf32> -> vector<8x32xf32>
    %88 = arith.addf %86, %87 : vector<8x32xf32>
    %89 = math.tanh %88 : vector<8x32xf32>
    %c0_40 = arith.constant 0 : index
    %c9 = arith.constant 9 : index
    %c0_41 = arith.constant 0 : index
    %90 = vector.load %arg6[%c0_40, %c9, %c0_41] : memref<8x16x32xf32, #tpu.memory_space<vmem>>, vector<8x1x32xf32>
    %91 = vector.shape_cast %90 : vector<8x1x32xf32> to vector<8x32xf32>
    %92 = vector.shape_cast %89 : vector<8x32xf32> to vector<8x1x32xf32>
    tpu.vector_store %arg6[%c0_40, %c9, %c0_41], %92 {strides = array<i32>} : memref<8x16x32xf32, #tpu.memory_space<vmem>>, vector<8x1x32xf32>,
    %93 = vector.extract_strided_slice %10 {offsets = [0, 10, 0], sizes = [8, 1, 32], strides = [1, 1, 1]} : vector<8x16x32xf32> to vector<8x1x32xf32>
    %94 = vector.shape_cast %93 : vector<8x1x32xf32> to vector<8x32xf32>
    %cst_42 = arith.constant dense<0.000000e+00> : vector<8x32xf32>
    %95 = tpu.matmul %89, %11, %cst_42 {dimension_numbers = #tpu.dot_dimension_numbers<[1], [0], [0], [1], [0, 0, 1, 1], [], []>} : vector<8x32xf32>, vector<32x32xf32>, vector<8x32xf32> -> vector<8x32xf32>
    %96 = arith.addf %94, %95 : vector<8x32xf32>
    %97 = math.tanh %96 : vector<8x32xf32>
    %c0_43 = arith.constant 0 : index
    %c10 = arith.constant 10 : index
    %c0_44 = arith.constant 0 : index
    %98 = vector.load %arg6[%c0_43, %c10, %c0_44] : memref<8x16x32xf32, #tpu.memory_space<vmem>>, vector<8x1x32xf32>
    %99 = vector.shape_cast %98 : vector<8x1x32xf32> to vector<8x32xf32>
    %100 = vector.shape_cast %97 : vector<8x32xf32> to vector<8x1x32xf32>
    tpu.vector_store %arg6[%c0_43, %c10, %c0_44], %100 {strides = array<i32>} : memref<8x16x32xf32, #tpu.memory_space<vmem>>, vector<8x1x32xf32>,
    %101 = vector.extract_strided_slice %10 {offsets = [0, 11, 0], sizes = [8, 1, 32], strides = [1, 1, 1]} : vector<8x16x32xf32> to vector<8x1x32xf32>
    %102 = vector.shape_cast %101 : vector<8x1x32xf32> to vector<8x32xf32>
    %cst_45 = arith.constant dense<0.000000e+00> : vector<8x32xf32>
    %103 = tpu.matmul %97, %11, %cst_45 {dimension_numbers = #tpu.dot_dimension_numbers<[1], [0], [0], [1], [0, 0, 1, 1], [], []>} : vector<8x32xf32>, vector<32x32xf32>, vector<8x32xf32> -> vector<8x32xf32>
    %104 = arith.addf %102, %103 : vector<8x32xf32>
    %105 = math.tanh %104 : vector<8x32xf32>
    %c0_46 = arith.constant 0 : index
    %c11 = arith.constant 11 : index
    %c0_47 = arith.constant 0 : index
    %106 = vector.load %arg6[%c0_46, %c11, %c0_47] : memref<8x16x32xf32, #tpu.memory_space<vmem>>, vector<8x1x32xf32>
    %107 = vector.shape_cast %106 : vector<8x1x32xf32> to vector<8x32xf32>
    %108 = vector.shape_cast %105 : vector<8x32xf32> to vector<8x1x32xf32>
    tpu.vector_store %arg6[%c0_46, %c11, %c0_47], %108 {strides = array<i32>} : memref<8x16x32xf32, #tpu.memory_space<vmem>>, vector<8x1x32xf32>,
    %109 = vector.extract_strided_slice %10 {offsets = [0, 12, 0], sizes = [8, 1, 32], strides = [1, 1, 1]} : vector<8x16x32xf32> to vector<8x1x32xf32>
    %110 = vector.shape_cast %109 : vector<8x1x32xf32> to vector<8x32xf32>
    %cst_48 = arith.constant dense<0.000000e+00> : vector<8x32xf32>
    %111 = tpu.matmul %105, %11, %cst_48 {dimension_numbers = #tpu.dot_dimension_numbers<[1], [0], [0], [1], [0, 0, 1, 1], [], []>} : vector<8x32xf32>, vector<32x32xf32>, vector<8x32xf32> -> vector<8x32xf32>
    %112 = arith.addf %110, %111 : vector<8x32xf32>
    %113 = math.tanh %112 : vector<8x32xf32>
    %c0_49 = arith.constant 0 : index
    %c12 = arith.constant 12 : index
    %c0_50 = arith.constant 0 : index
    %114 = vector.load %arg6[%c0_49, %c12, %c0_50] : memref<8x16x32xf32, #tpu.memory_space<vmem>>, vector<8x1x32xf32>
    %115 = vector.shape_cast %114 : vector<8x1x32xf32> to vector<8x32xf32>
    %116 = vector.shape_cast %113 : vector<8x32xf32> to vector<8x1x32xf32>
    tpu.vector_store %arg6[%c0_49, %c12, %c0_50], %116 {strides = array<i32>} : memref<8x16x32xf32, #tpu.memory_space<vmem>>, vector<8x1x32xf32>,
    %117 = vector.extract_strided_slice %10 {offsets = [0, 13, 0], sizes = [8, 1, 32], strides = [1, 1, 1]} : vector<8x16x32xf32> to vector<8x1x32xf32>
    %118 = vector.shape_cast %117 : vector<8x1x32xf32> to vector<8x32xf32>
    %cst_51 = arith.constant dense<0.000000e+00> : vector<8x32xf32>
    %119 = tpu.matmul %113, %11, %cst_51 {dimension_numbers = #tpu.dot_dimension_numbers<[1], [0], [0], [1], [0, 0, 1, 1], [], []>} : vector<8x32xf32>, vector<32x32xf32>, vector<8x32xf32> -> vector<8x32xf32>
    %120 = arith.addf %118, %119 : vector<8x32xf32>
    %121 = math.tanh %120 : vector<8x32xf32>
    %c0_52 = arith.constant 0 : index
    %c13 = arith.constant 13 : index
    %c0_53 = arith.constant 0 : index
    %122 = vector.load %arg6[%c0_52, %c13, %c0_53] : memref<8x16x32xf32, #tpu.memory_space<vmem>>, vector<8x1x32xf32>
    %123 = vector.shape_cast %122 : vector<8x1x32xf32> to vector<8x32xf32>
    %124 = vector.shape_cast %121 : vector<8x32xf32> to vector<8x1x32xf32>
    tpu.vector_store %arg6[%c0_52, %c13, %c0_53], %124 {strides = array<i32>} : memref<8x16x32xf32, #tpu.memory_space<vmem>>, vector<8x1x32xf32>,
    %125 = vector.extract_strided_slice %10 {offsets = [0, 14, 0], sizes = [8, 1, 32], strides = [1, 1, 1]} : vector<8x16x32xf32> to vector<8x1x32xf32>
    %126 = vector.shape_cast %125 : vector<8x1x32xf32> to vector<8x32xf32>
    %cst_54 = arith.constant dense<0.000000e+00> : vector<8x32xf32>
    %127 = tpu.matmul %121, %11, %cst_54 {dimension_numbers = #tpu.dot_dimension_numbers<[1], [0], [0], [1], [0, 0, 1, 1], [], []>} : vector<8x32xf32>, vector<32x32xf32>, vector<8x32xf32> -> vector<8x32xf32>
    %128 = arith.addf %126, %127 : vector<8x32xf32>
    %129 = math.tanh %128 : vector<8x32xf32>
    %c0_55 = arith.constant 0 : index
    %c14 = arith.constant 14 : index
    %c0_56 = arith.constant 0 : index
    %130 = vector.load %arg6[%c0_55, %c14, %c0_56] : memref<8x16x32xf32, #tpu.memory_space<vmem>>, vector<8x1x32xf32>
    %131 = vector.shape_cast %130 : vector<8x1x32xf32> to vector<8x32xf32>
    %132 = vector.shape_cast %129 : vector<8x32xf32> to vector<8x1x32xf32>
    tpu.vector_store %arg6[%c0_55, %c14, %c0_56], %132 {strides = array<i32>} : memref<8x16x32xf32, #tpu.memory_space<vmem>>, vector<8x1x32xf32>,
    %133 = vector.extract_strided_slice %10 {offsets = [0, 15, 0], sizes = [8, 1, 32], strides = [1, 1, 1]} : vector<8x16x32xf32> to vector<8x1x32xf32>
    %134 = vector.shape_cast %133 : vector<8x1x32xf32> to vector<8x32xf32>
    %cst_57 = arith.constant dense<0.000000e+00> : vector<8x32xf32>
    %135 = tpu.matmul %129, %11, %cst_57 {dimension_numbers = #tpu.dot_dimension_numbers<[1], [0], [0], [1], [0, 0, 1, 1], [], []>} : vector<8x32xf32>, vector<32x32xf32>, vector<8x32xf32> -> vector<8x32xf32>
    %136 = arith.addf %134, %135 : vector<8x32xf32>
    %137 = math.tanh %136 : vector<8x32xf32>
    %c0_58 = arith.constant 0 : index
    %c15 = arith.constant 15 : index
    %c0_59 = arith.constant 0 : index
    %138 = vector.load %arg6[%c0_58, %c15, %c0_59] : memref<8x16x32xf32, #tpu.memory_space<vmem>>, vector<8x1x32xf32>
    %139 = vector.shape_cast %138 : vector<8x1x32xf32> to vector<8x32xf32>
    %140 = vector.shape_cast %137 : vector<8x32xf32> to vector<8x1x32xf32>
    tpu.vector_store %arg6[%c0_58, %c15, %c0_59], %140 {strides = array<i32>} : memref<8x16x32xf32, #tpu.memory_space<vmem>>, vector<8x1x32xf32>,
    %c0_60 = arith.constant 0 : index
    %c0_61 = arith.constant 0 : index
    %141 = vector.load %arg8[%c0_60, %c0_61] : memref<8x32xf32, #tpu.memory_space<vmem>>, vector<8x32xf32>
    tpu.vector_store %arg8[%c0_60, %c0_61], %137 {strides = array<i32>} : memref<8x32xf32, #tpu.memory_space<vmem>>, vector<8x32xf32>,
    %c0_62 = arith.constant 0 : index
    %c0_63 = arith.constant 0 : index
    %142 = vector.load %arg7[%c0_62, %c0_63] : memref<8x32xf32, #tpu.memory_space<vmem>>, vector<8x32xf32>
    tpu.vector_store %arg7[%c0_62, %c0_63], %137 {strides = array<i32>} : memref<8x32xf32, #tpu.memory_space<vmem>>, vector<8x32xf32>,
    return
  }
  func.func @transform_0(%arg0: i32, %arg1: i32) -> (i32, i32, i32) {
    %c0_i32 = arith.constant 0 : i32
    %c0_i32_0 = arith.constant 0 : i32
    return %arg0, %arg1, %c0_i32 : i32, i32, i32
  }
  func.func @transform_1(%arg0: i32, %arg1: i32) -> (i32, i32) {
    %c0_i32 = arith.constant 0 : i32
    %c0_i32_0 = arith.constant 0 : i32
    %c0_i32_1 = arith.constant 0 : i32
    return %c0_i32, %c0_i32_0 : i32, i32
  }
  func.func @transform_2(%arg0: i32, %arg1: i32) -> (i32, i32) {
    %c0_i32 = arith.constant 0 : i32
    %c0_i32_0 = arith.constant 0 : i32
    %c0_i32_1 = arith.constant 0 : i32
    return %c0_i32, %c0_i32_0 : i32, i32
  }
  func.func @transform_3(%arg0: i32, %arg1: i32) -> (i32, i32) {
    %c0_i32 = arith.constant 0 : i32
    %c0_i32_0 = arith.constant 0 : i32
    %c0_i32_1 = arith.constant 0 : i32
    return %c0_i32, %c0_i32_0 : i32, i32
  }
  func.func @transform_4(%arg0: i32, %arg1: i32) -> (i32, i32, i32) {
    %c0_i32 = arith.constant 0 : i32
    %c0_i32_0 = arith.constant 0 : i32
    return %arg0, %arg1, %c0_i32 : i32, i32, i32
  }
  func.func @transform_5(%arg0: i32, %arg1: i32) -> (i32, i32) {
    %c0_i32 = arith.constant 0 : i32
    %c0_i32_0 = arith.constant 0 : i32
    return %arg0, %c0_i32 : i32, i32
  }
}

</mosaic_0001>

<bundles_post_ra>
// kernel: tpu_custom_call.1
= control target key start
LH: loop header
LB: loop body
LE: loop exit
PB: predicated region body
PF: predicated region fallthrough
CT: control target
= control target key end

     0   :  { %11 = vsyncpa [#allocation4], 0  ;;  %s4965_s0 = inlined_call_operand.hbm [shape: f32[16,16,16], index: 0, kind: input, shape index: {}]   ;;  %s4966_s1 = inlined_call_operand.hbm [shape: f32[16,32], index: 1, kind: input, shape index: {}]   ;;  %s4967_s2 = inlined_call_operand.hbm [shape: f32[32,32], index: 2, kind: input, shape index: {}]   ;;  %s4968_s3 = inlined_call_operand.vmem [shape: f32[1,32], index: 3, kind: input, shape index: {}]   ;;  %s4969_s4 = inlined_call_operand.hbm [shape: f32[16,16,32], index: 4, kind: output, shape index: {0}]   ;;  %s4970_s5 = inlined_call_operand.hbm [shape: f32[16,32], index: 5, kind: output, shape index: {1}]  }
   0x1   :  { %13 = vsyncpa [#allocation4 + $0x1], 0 }
   0x2   :  { %14 = vsyncpa [#allocation7], 0 }
   0x3   :  { %15 = vsyncpa [#allocation5], 0 }
   0x4   :  { %17 = vsyncpa [#allocation5 + $0x1], 0 }
   0x5   :  { %18 = vsyncpa [#allocation11], 0 }
   0x6   :  { %20 = vsyncpa [#allocation11 + $0x1], 0  ;;  %s3938_s18 = smov 0   ;;  %s3940_s19 = smov 0  }
   0x7   :  { %s3942_s20 = smov 0   ;;  %s3944_s21 = smov 0  }
   0x8   :  { %s3946_s22 = smov 0   ;;  %s3948_s23 = smov 0  }
   0x9 LB: > { %s2876_s24 = sadd.s32 4294967295, %s3894_s23   ;;  %s2877_s25 = sadd.s32 4294967294, %s3894_s23   ;;  %s3894_s23 = sphi %s3948_s23, %s26_s23   ;;  %s3890_s22 = sphi %s3946_s22, %s5002_s22   ;;  %s3886_s21 = sphi %s3944_s21, %s5001_s21   ;;  %s3882_s20 = sphi %s3942_s20, %s5000_s20   ;;  %s3878_s19 = sphi %s3940_s19, %s4999_s19   ;;  %s3874_s18 = sphi %s3938_s18, %s4998_s18  }
   0xa   : > { %p60_p0 = scmp.ne.s32.totalorder %s3878_s19, %s3874_s18  ;;  %p3972_p1 = scmp.eq.s32.totalorder %s2876_s24, 0 }
   0xb   : > { %p3976_p2 = scmp.eq.s32.totalorder %s2876_s24, 1  ;;  %p155_p3 = scmp.eq.s32.totalorder %s2877_s25, 1 }
   0xc   : > { %s4977_s26 = scalar_select %p3972_p1, 1, 0 }
   0xd   : > { %p3982_p4 = por %p3972_p1, %p60_p0  ;;  %p2878_p5 = scmp.ge.s32.totalorder %s3894_s23, 1 }
   0xe   : > { %p3987_p6 = por %p155_p3, %p60_p0  ;;  %p188_p7 = scmp.lt.s32.totalorder %s3894_s23, 3 }
   0xf   : > { %s4979_s28 = scalar_select %p3982_p4, 1, 0 }
  0x10   : > { %s4980_s29 = scalar_select %p3987_p6, 1, 0 }
  0x11   : > { %p3992_p8 = pnand %p2878_p5, %p188_p7  ;;  %s3896_s6 = smov [#allocation6]  }
  0x12   : > { %s200_s7 = sshll.u32 %s3896_s6, 4  ;;  %s3897_s9 = smov [#allocation8]   ;;  %s3996_s7 = int_to_ptr.vmem [resolvable:$true] %s200_s7 }
  0x13   : > { %p3353_p9 = pneg %p3992_p8  ;;  %s213_s10 = sshll.u32 %s3897_s9, 4  ;;  %s4007_s10 = int_to_ptr.vmem [resolvable:$true] %s213_s10 }
  0x14   : > { %s3690_s13 = scalar_lea.hbm %s4966_s1, 256 }
  0x15   : > { %p4003_p11 = pnand %p3353_p9, %p3972_p1  ;;  %p3691_p12 = scmp.ne.s32.totalorder %s4966_s1, %s3690_s13 }
  0x16   : > { %p3697_p5 = scmp.lt.u32.totalorder %s3690_s13, %s4966_s1 }
  0x17   : > { %p3692_p13 = pneg %p4003_p11 }
  0x19   : > { %p3693_p0 = pnand %p3692_p13, %p3691_p12 }
  0x1b   : > { %p3694_p3 = pneg %p3693_p0 }
  0x1d   : > { %p3699_p7 = pnand %p3697_p5, %p3694_p3 }
  0x1f   : > { %3702 = shalt.err (!%p3699_p7)
}
  0x20   : > { %s3703_s24 = scalar_lea.vmem %s3996_s7, 256  ;;  %p3711_p1 = scmp.lt.s32.totalorder %s3996_s7, %s3996_s7 }
  0x21   : > { %p3704_p9 = scmp.ne.s32.totalorder %s3996_s7, %s3703_s24  ;;  %p3712_p12 = scmp.lt.s32.totalorder %s3703_s24, %s3703_s24 }
  0x23   : > { %p3706_p10 = pnand %p3704_p9, %p3692_p13  ;;  %p3713_p0 = por %p3712_p12, %p3711_p1 }
  0x25   : > { %p3707_p6 = pneg %p3706_p10 }
  0x27   : > { %p3714_p4 = pnand %p3713_p0, %p3707_p6 }
  0x29   : > { %3717 = shalt.err (!%p3714_p4)
}
  0x2a   : > { %s4974_s25 = smov 128   ;;  %s3899_s6 = smov 8  }
  0x2b   : > { %3356 = dma.hbm_to_vmem [thread:$0]  (!%p4003_p11), %s4966_s1, 256, %s3996_s7, [#allocation7], %s4974_s25, %s4974_s25, %s3899_s6  }
  0x2c   : > { %s3718_s14 = scalar_lea.hbm %s4967_s2, 512 }
  0x2d   : > { %p3719_p1 = scmp.ne.s32.totalorder %s4967_s2, %s3718_s14  ;;  %p3725_p10 = scmp.lt.u32.totalorder %s3718_s14, %s4967_s2 }
  0x2f   : > { %p3721_p4 = pnand %p3719_p1, %p3692_p13 }
  0x31   : > { %p3722_p6 = pneg %p3721_p4 }
  0x33   : > { %p3727_p3 = pnand %p3725_p10, %p3722_p6 }
  0x35   : > { %3730 = shalt.err (!%p3727_p3)
}
  0x36   : > { %s3731_s7 = scalar_lea.vmem %s4007_s10, 512  ;;  %p3739_p12 = scmp.lt.s32.totalorder %s4007_s10, %s4007_s10 }
  0x37   : > { %p3732_p5 = scmp.ne.s32.totalorder %s4007_s10, %s3731_s7  ;;  %p3740_p0 = scmp.lt.s32.totalorder %s3731_s7, %s3731_s7 }
  0x39   : > { %p3734_p7 = pnand %p3732_p5, %p3692_p13  ;;  %p3741_p1 = por %p3740_p0, %p3739_p12 }
  0x3b   : > { %p3735_p9 = pneg %p3734_p7 }
  0x3d   : > { %p3742_p4 = pnand %p3741_p1, %p3735_p9 }
  0x3f   : > { %3745 = shalt.err (!%p3742_p4)
}
  0x40   : > { %3359 = dma.hbm_to_vmem [thread:$0]  (!%p4003_p11), %s4967_s2, 512, %s4007_s10, [#allocation7], %s4974_s25, %s4974_s25, %s3899_s6  }
  0x41   : > { %s38_s8 = sadd.s32 1, %s3890_s22  ;;  %s47_s12 = sadd.s32 1, %s3882_s20 }
  0x42   : > { %p40_p13 = scmp.ge.s32.totalorder %s38_s8, 2  ;;  %p54_p6 = scmp.ne.s32.totalorder %s3882_s20, %s3878_s19 }
  0x43   : > { %p55_p10 = scmp.eq.s32.totalorder %s3894_s23, 0  ;;  %p3373_p3 = scmp.lt.s32.totalorder %s3894_s23, 2 }
  0x44   : > { %s5004_s8 = smov (%p40_p13, %s38_s8), 0  ;;  %p4077_p7 = por %p3976_p2, %p54_p6 }
  0x45   : > { %p56_p5 = por %p55_p10, %p54_p6  ;;  %s42_s14 = ssub.s32 %s3890_s22, %s5004_s8 }
  0x46   : > { %s4983_s13 = scalar_select %p4077_p7, 1, 0 }
  0x47   : > { %s230_s15 = sand.u32 1, %s3882_s20   ;;  %p45_p9 = scmp.eq.s32.totalorder %s42_s14, 0 }
  0x48   : > { %s2882_s10 = sshll.u32 %s230_s15, 7  ;;  %s2934_s16 = sshll.u32 %s3890_s22, 11 }
  0x49   : > { %s4086_s17 = scalar_select %p45_p9, %s3882_s20, %s47_s12  }
  0x4a   : > { %s4091_s9 = scalar_lea.hbm %s4965_s0, %s2934_s16  ;;  %s234_s27 = scalar_lea.vmem [#allocation3], %s2882_s10 }
  0x4b   : > { %s244_s11 = sshll.u32 %s234_s27, 4  ;;  %p4095_p2 = pnand %p3373_p3, %p56_p5  ;;  %s4099_s11 = int_to_ptr.vmem [resolvable:$true] %s244_s11 }
  0x4c   : > { %s4101_s12 = scalar_lea.sflag [#allocation4], %s230_s15  ;;  %s3746_s14 = scalar_lea.hbm %s4091_s9, 2048 }
  0x4d   : > { %p3747_p11 = scmp.ne.s32.totalorder %s4091_s9, %s3746_s14  ;;  %p3748_p12 = pneg %p4095_p2 }
  0x4e   : > { %s3751_s24 = scalar_lea.hbm %s4965_s0, 4096  ;;  %p3752_p4 = scmp.lt.u32.totalorder %s4091_s9, %s4965_s0 }
  0x4f   : > { %p3749_p0 = pnand %p3748_p12, %p3747_p11  ;;  %p3753_p13 = scmp.lt.u32.totalorder %s3751_s24, %s3746_s14 }
  0x50   : > { %p3755_p10 = scmp.lt.u32.totalorder %s3746_s14, %s4091_s9 }
  0x51   : > { %p3750_p1 = pneg %p3749_p0  ;;  %p3754_p6 = por %p3753_p13, %p3752_p4 }
  0x53   : > { %p3756_p3 = por %p3755_p10, %p3754_p6 }
  0x55   : > { %p3757_p5 = pnand %p3756_p3, %p3750_p1 }
  0x57   : > { %3760 = shalt.err (!%p3757_p5)
}
  0x58   : > { %s3761_s15 = scalar_lea.vmem %s4099_s11, 2048  ;;  %s3900_s10 = smov [#allocation3]  }
  0x59   : > { %p3762_p9 = scmp.ne.s32.totalorder %s4099_s11, %s3761_s15  ;;  %s3766_s16 = sshll.u32 %s3900_s10, 4  ;;  %s3767_s16 = int_to_ptr.vmem [resolvable:$false] %s3766_s16 }
  0x5a   : > { %s3768_s7 = scalar_lea.vmem %s3767_s16, 4096  ;;  %p3769_p7 = scmp.lt.s32.totalorder %s4099_s11, %s3767_s16 }
  0x5b   : > { %p3764_p11 = pnand %p3762_p9, %p3748_p12  ;;  %p3770_p4 = scmp.lt.s32.totalorder %s3768_s7, %s3761_s15 }
  0x5d   : > { %p3765_p0 = pneg %p3764_p11  ;;  %p3771_p13 = por %p3770_p4, %p3769_p7 }
  0x5f   : > { %p3772_p6 = pnand %p3771_p13, %p3765_p0 }
  0x61   : > { %3775 = shalt.err (!%p3772_p6)
}
  0x62   : > { %s4985_s14 = smov 128   ;;  %256 = sbr.rel (%p3992_p8) target bundleno = 3962 (0xf7a), region = 36 }
  0x63   : > { %3363 = dma.hbm_to_vmem [thread:$0]  (!%p4095_p2), %s4091_s9, 2048, %s4099_s11, %s4101_s12, %s4985_s14, %s4985_s14, %s3899_s6  }
  0x64   : > { %s4135_s24 = sand.u32 (!%p3992_p8), 1, %s3878_s19   ;;  %p4986_p7 = scmp.ne.s32.totalorder (!%p3992_p8), %s4979_s28, 0 }
  0x65   : > { %s2887_s27 = sshll.u32 (!%p3992_p8), %s4135_s24, 7  ;;  %s259_s15 = scalar_lea.sflag (!%p3992_p8), [#allocation4], %s4135_s24 }
  0x66   : > { %s4141_s25 = scalar_lea.vmem (!%p3992_p8), [#allocation3], %s2887_s27 }
  0x69   : > { %3857 = dma.done.wait (%p4986_p7), %s259_s15, 2048  }
  0x6a   : > { %3859 = vsyncadd (%p4986_p7), %s259_s15, 4294965248  ;;  %p4987_p2 = scmp.ne.s32.totalorder %s4977_s26, 0 }
  0x6c   : > { %3861 = dma.done.wait (%p4987_p2), [#allocation7], 768  }
  0x6d   : > { %3863 = vsyncadd (%p4987_p2), [#allocation7], 4294966528  ;;  %v3901_v0 = vmov 0.0|0.0   ;;  %vm3902_vm0 = vmmov 0   ;;  %v3903_v1 = vmov 0.0   ;;  %vm310_vm1 = vcmask 261120  }
  0x6e   : > { %3243 = vmatprep.subr.bf16.mxu1 %v3901_v0  ;;  %3071 = vmatprep.mubr.msk.f32.mxu1 %vm3902_vm0, %v3903_v1  ;;  %311 = vst.msk [vmem:[#allocation2] sm:$0xff] %vm310_vm1, %v3903_v1  ;;  %vm337_vm2 = vcmask 130048   ;;  %v328_v2 = vld [vmem:[#allocation6] sm:$0xff]  ;;  %v329_v3 = vld [vmem:[#allocation6 + $0x8] sm:$0xff]  ;;  %v531_v4 = vld [vmem:[#allocation8] sm:$0xff]  ;;  %vm642_vm3 = vcmask 253952  }
  0x6f   : > { %v3239_v5 = vpack.c.bf16 %v329_v3, %v328_v2  ;;  %v532_v6 = vld [vmem:[#allocation8 + $0x8] sm:$0xff]  ;;  %v312_v7 = vld [vmem:[%s4141_s25] sm:$0xff]  ;;  %v534_v10 = vld [vmem:[#allocation8 + $0x18] sm:$0xff]  ;;  %s4258_s30 = scalar_lea.vmem [#allocation9], %s2887_s27  ;;  %vm660_vm4 = vcmask 1041409   ;;  %vm663_vm5 = vcmask 1042434  }
  0x70   : > { %v4157_v8 = vpack.c.bf16 %v532_v6, %v531_v4  ;;  %3039 = vmatprep.mubr.msk.f32.mxu0 %vm337_vm2, %v312_v7  ;;  %v533_v9 = vld [vmem:[#allocation8 + $0x10] sm:$0xff]  ;;  %v313_v11 = vld [vmem:[%s4141_s25 + $0x8] sm:$0xff]  ;;  %v314_v13 = vld [vmem:[%s4141_s25 + $0x10] sm:$0xff]  ;;  %vm666_vm6 = vcmask 1043459   ;;  %vm669_vm7 = vcmask 1044484   ;;  %vm672_vm8 = vcmask 1045509  }
  0x71   : > { %3240 = vmatprep.subr.bf16.mxu0 %v3239_v5  ;;  %v4162_v12 = vpack.c.bf16 %v534_v10, %v533_v9  ;;  %v315_v15 = vld [vmem:[%s4141_s25 + $0x18] sm:$0xff]  ;;  %v316_v16 = vld [vmem:[%s4141_s25 + $0x20] sm:$0xff]  ;;  %v317_v17 = vld [vmem:[%s4141_s25 + $0x28] sm:$0xff]  ;;  %vm675_vm9 = vcmask 1046534   ;;  %vm678_vm10 = vcmask 1047559   ;;  %vm784_vm11 = vcmask 254977  }
  0x72   : > { %3245 = vmatpush3.bf16.msra.mxu1 %v4157_v8  ;;  %3242 = vmatpush3.bf16.msra.mxu0 %v3239_v5  ;;  %v318_v18 = vld [vmem:[%s4141_s25 + $0x30] sm:$0xff]  ;;  %v319_v19 = vld [vmem:[%s4141_s25 + $0x38] sm:$0xff]  ;;  %v320_v20 = vld [vmem:[%s4141_s25 + $0x40] sm:$0xff]  ;;  %vm919_vm12 = vcmask 256002   ;;  %vm1054_vm13 = vcmask 257027   ;;  %vm1189_vm14 = vcmask 258052  }
  0x73   : > { %3246 = vmatprep.subr.bf16.mxu1 %v3901_v0  ;;  %3267 = vmatprep.subr.bf16.mxu0 %v3901_v0  ;;  %v321_v21 = vld [vmem:[%s4141_s25 + $0x48] sm:$0xff]  ;;  %v322_v22 = vld [vmem:[%s4141_s25 + $0x50] sm:$0xff]  ;;  %v323_v23 = vld [vmem:[%s4141_s25 + $0x58] sm:$0xff]  ;;  %vm1324_vm15 = vcmask 259077   ;;  %s2891_s6 = sshll.u32 %s4135_s24, 3  ;;  %s2936_s9 = sshll.u32 %s3886_s21, 11 }
  0x74   : > { %v324_v24 = vld [vmem:[%s4141_s25 + $0x60] sm:$0xff]  ;;  %v325_v25 = vld [vmem:[%s4141_s25 + $0x68] sm:$0xff]  ;;  %v326_v26 = vld [vmem:[%s4141_s25 + $0x70] sm:$0xff]  ;;  %s2725_s11 = sshll.u32 %s4258_s30, 4  ;;  %s4852_s12 = scalar_lea.vmem [#allocation10], %s2891_s6  ;;  %s4867_s11 = int_to_ptr.vmem [resolvable:$true] %s2725_s11 }
  0x75   : > { %3040 = vmatmul.mubr.msk.f32.vlgmr.msra.gmra.mrb[0].mxu0 %vm337_vm2, %v313_v11  ;;  %v535_v14 = vld [vmem:[#allocation2] sm:$0xff]  ;;  %s4865_s7 = scalar_lea.hbm %s4969_s4, %s2936_s9  ;;  %s2930_s14 = sshll.u32 %s3886_s21, 7 }
  0x76   : > { %3248 = vmatpush3.bf16.msra.mxu1 %v4162_v12  ;;  %3042 = vmatprep.mubr.msk.f32.mxu0 %vm337_vm2, %v314_v13  ;;  %v327_v27 = vld [vmem:[%s4141_s25 + $0x78] sm:$0xff]  ;;  %s2741_s27 = sshll.u32 %s4852_s12, 4  ;;  %s2704_s15 = scalar_lea.sflag [#allocation5], %s4135_s24  ;;  %s4916_s27 = int_to_ptr.vmem [resolvable:$true] %s2741_s27 }
  0x77   : > { %3249 = vmatprep.subr.bf16.mxu1 %v3901_v0  ;;  %3269 = vmatpush3.bf16.msra.mxu0 %v4157_v8  ;;  %v4213_v28 = vld [vmem:[%s4968_s3] ss:$0 sm:$0xff]  ;;  %s3776_s25 = scalar_lea.vmem %s4867_s11, 2048  ;;  %p4995_p12 = scmp.ne.s32.totalorder %s4983_s13, 0 }
  0x78   : > { %3270 = vmatprep.subr.bf16.mxu0 %v3901_v0  ;;  %p3777_p8 = scmp.ne.s32.totalorder %s4867_s11, %s3776_s25  ;;  %s3904_s26 = smov [#allocation9]  }
  0x79   : > { %3072 = vmatmul.mubr.msk.f32.vlgmr.msra.gmra.mrb[0].mxu1 %vm310_vm1, %v535_v14  ;;  %3043 = vmatmul.mubr.msk.f32.gmra.mrb[2].mxu0 %vm337_vm2, %v315_v15  ;;  %s3780_s28 = sshll.u32 %s3904_s26, 4  ;;  %s3781_s28 = int_to_ptr.vmem [resolvable:$false] %s3780_s28 }
  0x7a   : > { %3045 = vmatprep.mubr.msk.f32.mxu0 %vm337_vm2, %v316_v16  ;;  %3251 = vmatpush3.bf16.msra.mxu1 %v4157_v8  ;;  %p3778_p1 = pnand %p3777_p8, %p4995_p12  ;;  %s3782_s6 = scalar_lea.vmem %s3781_s28, 4096 }
  0x7b   : > { %3252 = vmatprep.subr.bf16.mxu1 %v3901_v0  ;;  %3082 = vmatprep.mubr.msk.f32.mxu1 %vm3902_vm0, %v3903_v1  ;;  %p3783_p3 = scmp.lt.s32.totalorder %s4867_s11, %s3781_s28  ;;  %p3784_p5 = scmp.lt.s32.totalorder %s3782_s6, %s3776_s25 }
  0x7c   : > { %3272 = vmatpush3.bf16.msra.mxu0 %v4162_v12  ;;  %p3779_p10 = pneg %p3778_p1 }
  0x7d   : > { %3046 = vmatmul.mubr.msk.f32.gmra.mrb[4].mxu0 %vm337_vm2, %v317_v17  ;;  %3279 = vmatprep.subr.bf16.mxu0 %v3901_v0  ;;  %p3785_p9 = por %p3784_p5, %p3783_p3 }
  0x7e   : > { %3048 = vmatprep.mubr.msk.f32.mxu0 %vm337_vm2, %v318_v18  ;;  %3254 = vmatpush3.bf16.msra.mxu1 %v4162_v12 }
  0x7f   : > { %3255 = vmatprep.subr.bf16.mxu1 %v3901_v0  ;;  %p3786_p11 = pnand %p3785_p9, %p3779_p10 }
  0x81   : > { %3049 = vmatmul.mubr.msk.f32.gmra.mrb[6].mxu0 %vm337_vm2, %v319_v19 }
  0x82   : > { %3051 = vmatprep.mubr.msk.f32.mxu0 %vm337_vm2, %v320_v20 }
  0x85   : > { %3052 = vmatmul.mubr.msk.f32.gmra.mrb[8].mxu0 %vm337_vm2, %v321_v21 }
  0x86   : > { %3054 = vmatprep.mubr.msk.f32.mxu0 %vm337_vm2, %v322_v22 }
  0x89   : > { %3055 = vmatmul.mubr.msk.f32.gmra.mrb[10].mxu0 %vm337_vm2, %v323_v23 }
  0x8a   : > { %3057 = vmatprep.mubr.msk.f32.mxu0 %vm337_vm2, %v324_v24 }
  0x8d   : > { %3058 = vmatmul.mubr.msk.f32.gmra.mrb[12].mxu0 %vm337_vm2, %v325_v25 }
  0x8e   : > { %3060 = vmatprep.mubr.msk.f32.mxu0 %vm337_vm2, %v326_v26 }
  0x91   : > { %3061 = vmatmul.mubr.msk.f32.gmra.mrb[14].mxu0 %vm337_vm2, %v327_v27  ;;  %vm4976_vm2 = vcmask 260102  }
  0x92   : > { %3115 = vmatprep.mubr.msk.f32.mxu0 %vm3902_vm0, %v3903_v1 }
 0x148   : > { %v3041_v29 = vpop.f32.mrb[0].mxu0 }
 0x149   : > { %v4216_v30 = vadd.f32 %v3041_v29, %v4213_v28  ;;  %v452_v31 = vpop.f32.mrb[1].mxu0 }
 0x14a   : > { %v4219_v32 = vadd.f32 %v4213_v28, %v452_v31 }
 0x14c   : > { %v4221_v33 = vpop.f32.mrb[0].mxu1  ;;  %v3044_v34 = vpop.f32.mrb[2].mxu0 }
 0x14d   : > { %v611_v35 = vrot.slane %v4221_v33, 1  ;;  %v462_v36 = vpop.f32.mrb[3].mxu0  ;;  %v3073_v37 = vpop.f32.mrb[1].mxu1  ;;  %v626_v38 = vadd.f32 %v4221_v33, %v4219_v32  ;;  %v4227_v39 = vadd.f32 %v3044_v34, %v4213_v28  ;;  %v612_v41 = vrot.slane %v4221_v33, 2 }
 0x14e   : > { %v4230_v40 = vadd.f32 %v4213_v28, %v462_v36  ;;  %v613_v47 = vrot.slane %v4221_v33, 3  ;;  %v614_v53 = vrot.slane %v4221_v33, 4  ;;  %v615_v60 = vrot.slane %v4221_v33, 5 }
 0x14f   : > { %3434 = vtanh.f32 %v626_v38  ;;  %v616_v11 = vrot.slane %v4221_v33, 6  ;;  %v617_v19 = vrot.slane %v4221_v33, 7 }
 0x150   : > { %v3047_v42 = vpop.f32.mrb[4].mxu0  ;;  %v627_v43 = vadd.f32 %v611_v35, %v4230_v40 }
 0x151   : > { %v4235_v44 = vadd.f32 %v3047_v42, %v4213_v28  ;;  %v472_v45 = vpop.f32.mrb[5].mxu0 }
 0x152   : > { %v4238_v46 = vadd.f32 %v4213_v28, %v472_v45  ;;  %3436 = vtanh.f32 %v627_v43 }
 0x154   : > { %v628_v48 = vadd.f32 %v612_v41, %v4238_v46  ;;  %v3050_v49 = vpop.f32.mrb[6].mxu0 }
 0x155   : > { %v4243_v50 = vadd.f32 %v3050_v49, %v4213_v28  ;;  %v482_v51 = vpop.f32.mrb[7].mxu0 }
 0x156   : > { %v4246_v52 = vadd.f32 %v4213_v28, %v482_v51  ;;  %3438 = vtanh.f32 %v628_v48 }
 0x158   : > { %v3053_v54 = vpop.f32.mrb[8].mxu0  ;;  %v629_v55 = vadd.f32 %v613_v47, %v4246_v52 }
 0x159   : > { %v4251_v56 = vadd.f32 %v3053_v54, %v4213_v28  ;;  %v492_v57 = vpop.f32.mrb[9].mxu0  ;;  %v3435_v58 = vpop.eup %3434 }
 0x15a   : > { %v4254_v59 = vadd.f32 %v4213_v28, %v492_v57  ;;  %3440 = vtanh.f32 %v629_v55  ;;  %643 = vst.msk [vmem:[%s4258_s30] sm:$0x1] %vm642_vm3, %v3435_v58 }
 0x15c   : > { %v3056_v61 = vpop.f32.mrb[10].mxu0  ;;  %v630_v62 = vadd.f32 %v614_v53, %v4254_v59  ;;  %v3437_v63 = vpop.eup %3436 }
 0x15d   : > { %v4265_v2 = vadd.f32 %v3056_v61, %v4213_v28  ;;  %v502_v3 = vpop.f32.mrb[11].mxu0  ;;  %644 = vst.msk [vmem:[%s4258_s30 + $0x10] sm:$0x1] %vm642_vm3, %v3437_v63  ;;  %v659_v24 = vrot.slane %v3437_v63, 7 }
 0x15e   : > { %v4270_v4 = vadd.f32 %v4213_v28, %v502_v3  ;;  %3442 = vtanh.f32 %v630_v62 }
 0x15f   : > { %v661_v29 = vsel %vm660_vm4, %v659_v24, %v3435_v58 }
 0x160   : > { %v3439_v5 = vpop.eup %3438  ;;  %v3059_v6 = vpop.f32.mrb[12].mxu0  ;;  %v631_v7 = vadd.f32 %v615_v60, %v4270_v4 }
 0x161   : > { %v4274_v9 = vadd.f32 %v3059_v6, %v4213_v28  ;;  %v512_v10 = vpop.f32.mrb[13].mxu0  ;;  %645 = vst.msk [vmem:[%s4258_s30 + $0x20] sm:$0x1] %vm642_vm3, %v3439_v5  ;;  %v662_v25 = vrot.slane %v3439_v5, 6 }
 0x162   : > { %v4280_v13 = vadd.f32 %v4213_v28, %v512_v10  ;;  %3444 = vtanh.f32 %v631_v7 }
 0x163   : > { %v664_v33 = vsel %vm663_vm5, %v662_v25, %v661_v29 }
 0x164   : > { %v3441_v14 = vpop.eup %3440  ;;  %v3062_v15 = vpop.f32.mrb[14].mxu0  ;;  %v632_v16 = vadd.f32 %v616_v11, %v4280_v13 }
 0x165   : > { %v4284_v17 = vadd.f32 %v3062_v15, %v4213_v28  ;;  %v522_v18 = vpop.f32.mrb[15].mxu0  ;;  %646 = vst.msk [vmem:[%s4258_s30 + $0x30] sm:$0x1] %vm642_vm3, %v3441_v14  ;;  %v665_v26 = vrot.slane %v3441_v14, 5 }
 0x166   : > { %v4290_v20 = vadd.f32 %v4213_v28, %v522_v18  ;;  %3446 = vtanh.f32 %v632_v16 }
 0x167   : > { %v667_v35 = vsel %vm666_vm6, %v665_v26, %v664_v33 }
 0x168   : > { %v3443_v21 = vpop.eup %3442  ;;  %v633_v22 = vadd.f32 %v617_v19, %v4290_v20 }
 0x169   : > { %647 = vst.msk [vmem:[%s4258_s30 + $0x40] sm:$0x1] %vm642_vm3, %v3443_v21  ;;  %v668_v28 = vrot.slane %v3443_v21, 4 }
 0x16a   : > { %3448 = vtanh.f32 %v633_v22 }
 0x16b   : > { %v670_v37 = vsel %vm669_vm7, %v668_v28, %v667_v35 }
 0x16c   : > { %v3445_v23 = vpop.eup %3444 }
 0x16d   : > { %648 = vst.msk [vmem:[%s4258_s30 + $0x50] sm:$0x1] %vm642_vm3, %v3445_v23  ;;  %v671_v31 = vrot.slane %v3445_v23, 3 }
 0x16f   : > { %v673_v38 = vsel %vm672_vm8, %v671_v31, %v670_v37 }
 0x170   : > { %v3447_v27 = vpop.eup %3446 }
 0x171   : > { %649 = vst.msk [vmem:[%s4258_s30 + $0x60] sm:$0x1] %vm642_vm3, %v3447_v27  ;;  %v674_v34 = vrot.slane %v3447_v27, 2 }
 0x173   : > { %v676_v42 = vsel %vm675_vm9, %v674_v34, %v673_v38 }
 0x174   : > { %v3449_v36 = vpop.eup %3448 }
 0x175   : > { %650 = vst.msk [vmem:[%s4258_s30 + $0x70] sm:$0x1] %vm642_vm3, %v3449_v36  ;;  %v677_v41 = vrot.slane %v3449_v36, 1 }
 0x177   : > { %v679_v43 = vsel %vm678_vm10, %v677_v41, %v676_v42 }
 0x178   : > { %3083 = vmatmul.mubr.msk.f32.vlgmr.msra.gmra.mrb[2].mxu1 %vm310_vm1, %v679_v43 }
 0x179   : > { %3257 = vmatpush3.bf16.msra.mxu1 %v4157_v8  ;;  %3093 = vmatprep.mubr.msk.f32.mxu1 %vm3902_vm0, %v3903_v1 }
 0x17a   : > { %3258 = vmatprep.subr.bf16.mxu1 %v3901_v0 }
 0x17d   : > { %3260 = vmatpush3.bf16.msra.mxu1 %v4162_v12 }
 0x17e   : > { %3261 = vmatprep.subr.bf16.mxu1 %v3901_v0 }
 0x24b   : > { %v748_v45 = vpop.f32.mrb[2].mxu1 }
 0x24c   : > { %v753_v47 = vrot.slane %v748_v45, 7  ;;  %v754_v48 = vrot.slane %v748_v45, 1  ;;  %v755_v49 = vrot.slane %v748_v45, 2  ;;  %v756_v51 = vrot.slane %v748_v45, 3  ;;  %v3084_v53 = vpop.f32.mrb[3].mxu1 }
 0x24d   : > { %v757_v54 = vrot.slane %v748_v45, 4  ;;  %v758_v55 = vrot.slane %v748_v45, 5  ;;  %v769_v57 = vadd.f32 %v748_v45, %v4230_v40  ;;  %v759_v58 = vrot.slane %v748_v45, 6 }
 0x24e   : > { %v768_v60 = vadd.f32 %v753_v47, %v4219_v32  ;;  %v770_v61 = vadd.f32 %v754_v48, %v4238_v46  ;;  %v771_v62 = vadd.f32 %v755_v49, %v4246_v52  ;;  %v772_v63 = vadd.f32 %v756_v51, %v4254_v59 }
 0x24f   : > { %3450 = vtanh.f32 %v769_v57  ;;  %v773_v3 = vadd.f32 %v757_v54, %v4270_v4  ;;  %v774_v5 = vadd.f32 %v758_v55, %v4280_v13  ;;  %v775_v6 = vadd.f32 %v759_v58, %v4290_v20 }
 0x250   : > { %3452 = vtanh.f32 %v768_v60 }
 0x251   : > { %3454 = vtanh.f32 %v770_v61 }
 0x252   : > { %3456 = vtanh.f32 %v771_v62 }
 0x253   : > { %3458 = vtanh.f32 %v772_v63 }
 0x254   : > { %3460 = vtanh.f32 %v773_v3 }
 0x255   : > { %3462 = vtanh.f32 %v774_v5 }
 0x256   : > { %3464 = vtanh.f32 %v775_v6 }
 0x259   : > { %v3451_v7 = vpop.eup %3450 }
 0x25a   : > { %v3453_v10 = vpop.eup %3452  ;;  %786 = vst.msk [vmem:[%s4258_s30 + $0x10] sm:$0x2] %vm784_vm11, %v3451_v7 }
 0x25b   : > { %v3455_v11 = vpop.eup %3454  ;;  %785 = vst.msk [vmem:[%s4258_s30] sm:$0x2] %vm784_vm11, %v3453_v10  ;;  %v801_v14 = vrot.slane %v3453_v10, 1 }
 0x25c   : > { %v3457_v15 = vpop.eup %3456  ;;  %787 = vst.msk [vmem:[%s4258_s30 + $0x20] sm:$0x2] %vm784_vm11, %v3455_v11  ;;  %v803_v16 = vrot.slane %v3455_v11, 7 }
 0x25d   : > { %v3459_v18 = vpop.eup %3458  ;;  %788 = vst.msk [vmem:[%s4258_s30 + $0x30] sm:$0x2] %vm784_vm11, %v3457_v15  ;;  %v802_v19 = vsel %vm660_vm4, %v3451_v7, %v801_v14  ;;  %v805_v21 = vrot.slane %v3457_v15, 6 }
 0x25e   : > { %v3461_v22 = vpop.eup %3460  ;;  %789 = vst.msk [vmem:[%s4258_s30 + $0x40] sm:$0x2] %vm784_vm11, %v3459_v18  ;;  %v804_v23 = vsel %vm663_vm5, %v803_v16, %v802_v19  ;;  %v807_v24 = vrot.slane %v3459_v18, 5 }
 0x25f   : > { %v3463_v25 = vpop.eup %3462  ;;  %790 = vst.msk [vmem:[%s4258_s30 + $0x50] sm:$0x2] %vm784_vm11, %v3461_v22  ;;  %v806_v26 = vsel %vm666_vm6, %v805_v21, %v804_v23  ;;  %v809_v27 = vrot.slane %v3461_v22, 4 }
 0x260   : > { %v3465_v28 = vpop.eup %3464  ;;  %791 = vst.msk [vmem:[%s4258_s30 + $0x60] sm:$0x2] %vm784_vm11, %v3463_v25  ;;  %v808_v29 = vsel %vm669_vm7, %v807_v24, %v806_v26  ;;  %v811_v31 = vrot.slane %v3463_v25, 3 }
 0x261   : > { %792 = vst.msk [vmem:[%s4258_s30 + $0x70] sm:$0x2] %vm784_vm11, %v3465_v28  ;;  %v810_v33 = vsel %vm672_vm8, %v809_v27, %v808_v29  ;;  %v813_v34 = vrot.slane %v3465_v28, 2 }
 0x262   : > { %v812_v35 = vsel %vm675_vm9, %v811_v31, %v810_v33 }
 0x263   : > { %v814_v36 = vsel %vm678_vm10, %v813_v34, %v812_v35 }
 0x264   : > { %3094 = vmatmul.mubr.msk.f32.vlgmr.msra.gmra.mrb[4].mxu1 %vm310_vm1, %v814_v36 }
 0x265   : > { %3263 = vmatpush3.bf16.msra.mxu1 %v4157_v8  ;;  %3104 = vmatprep.mubr.msk.f32.mxu1 %vm3902_vm0, %v3903_v1 }
 0x266   : > { %3264 = vmatprep.subr.bf16.mxu1 %v3901_v0 }
 0x269   : > { %3266 = vmatpush3.bf16.msra.mxu1 %v4162_v12 }
 0x26a   : > { %3273 = vmatprep.subr.bf16.mxu1 %v3901_v0 }
 0x337   : > { %v883_v37 = vpop.f32.mrb[4].mxu1 }
 0x338   : > { %v888_v38 = vrot.slane %v883_v37, 6  ;;  %v889_v41 = vrot.slane %v883_v37, 7  ;;  %v890_v42 = vrot.slane %v883_v37, 1  ;;  %v891_v43 = vrot.slane %v883_v37, 2  ;;  %v3095_v45 = vpop.f32.mrb[5].mxu1 }
 0x339   : > { %v892_v47 = vrot.slane %v883_v37, 3  ;;  %v893_v48 = vrot.slane %v883_v37, 4  ;;  %v905_v49 = vadd.f32 %v883_v37, %v4238_v46  ;;  %v894_v51 = vrot.slane %v883_v37, 5 }
 0x33a   : > { %v903_v53 = vadd.f32 %v888_v38, %v4219_v32  ;;  %v904_v54 = vadd.f32 %v889_v41, %v4230_v40  ;;  %v906_v55 = vadd.f32 %v890_v42, %v4246_v52  ;;  %v907_v57 = vadd.f32 %v891_v43, %v4254_v59 }
 0x33b   : > { %3466 = vtanh.f32 %v905_v49  ;;  %v908_v58 = vadd.f32 %v892_v47, %v4270_v4  ;;  %v909_v60 = vadd.f32 %v893_v48, %v4280_v13  ;;  %v910_v61 = vadd.f32 %v894_v51, %v4290_v20 }
 0x33c   : > { %3468 = vtanh.f32 %v903_v53 }
 0x33d   : > { %3470 = vtanh.f32 %v904_v54 }
 0x33e   : > { %3472 = vtanh.f32 %v906_v55 }
 0x33f   : > { %3474 = vtanh.f32 %v907_v57 }
 0x340   : > { %3476 = vtanh.f32 %v908_v58 }
 0x341   : > { %3478 = vtanh.f32 %v909_v60 }
 0x342   : > { %3480 = vtanh.f32 %v910_v61 }
 0x345   : > { %v3467_v62 = vpop.eup %3466 }
 0x346   : > { %v3469_v63 = vpop.eup %3468  ;;  %922 = vst.msk [vmem:[%s4258_s30 + $0x20] sm:$0x4] %vm919_vm12, %v3467_v62 }
 0x347   : > { %v3471_v3 = vpop.eup %3470  ;;  %920 = vst.msk [vmem:[%s4258_s30] sm:$0x4] %vm919_vm12, %v3469_v63  ;;  %v936_v5 = vrot.slane %v3469_v63, 2 }
 0x348   : > { %v3473_v6 = vpop.eup %3472  ;;  %921 = vst.msk [vmem:[%s4258_s30 + $0x10] sm:$0x4] %vm919_vm12, %v3471_v3  ;;  %v937_v7 = vrot.slane %v3471_v3, 1 }
 0x349   : > { %v3475_v10 = vpop.eup %3474  ;;  %923 = vst.msk [vmem:[%s4258_s30 + $0x30] sm:$0x4] %vm919_vm12, %v3473_v6  ;;  %v940_v15 = vrot.slane %v3473_v6, 7 }
 0x34a   : > { %v3477_v11 = vpop.eup %3476  ;;  %924 = vst.msk [vmem:[%s4258_s30 + $0x40] sm:$0x4] %vm919_vm12, %v3475_v10  ;;  %v938_v14 = vsel %vm660_vm4, %v937_v7, %v936_v5  ;;  %v942_v19 = vrot.slane %v3475_v10, 6 }
 0x34b   : > { %v3479_v16 = vpop.eup %3478  ;;  %925 = vst.msk [vmem:[%s4258_s30 + $0x50] sm:$0x4] %vm919_vm12, %v3477_v11  ;;  %v939_v18 = vsel %vm663_vm5, %v3467_v62, %v938_v14  ;;  %v944_v23 = vrot.slane %v3477_v11, 5 }
 0x34c   : > { %v3481_v21 = vpop.eup %3480  ;;  %926 = vst.msk [vmem:[%s4258_s30 + $0x60] sm:$0x4] %vm919_vm12, %v3479_v16  ;;  %v941_v22 = vsel %vm666_vm6, %v940_v15, %v939_v18  ;;  %v946_v25 = vrot.slane %v3479_v16, 4 }
 0x34d   : > { %927 = vst.msk [vmem:[%s4258_s30 + $0x70] sm:$0x4] %vm919_vm12, %v3481_v21  ;;  %v943_v24 = vsel %vm669_vm7, %v942_v19, %v941_v22  ;;  %v948_v27 = vrot.slane %v3481_v21, 3 }
 0x34e   : > { %v945_v26 = vsel %vm672_vm8, %v944_v23, %v943_v24 }
 0x34f   : > { %v947_v28 = vsel %vm675_vm9, %v946_v25, %v945_v26 }
 0x350   : > { %v949_v29 = vsel %vm678_vm10, %v948_v27, %v947_v28 }
 0x351   : > { %3105 = vmatmul.mubr.msk.f32.vlgmr.msra.gmra.mrb[6].mxu1 %vm310_vm1, %v949_v29 }
 0x352   : > { %3275 = vmatpush3.bf16.msra.mxu1 %v4157_v8  ;;  %3126 = vmatprep.mubr.msk.f32.mxu1 %vm3902_vm0, %v3903_v1 }
 0x353   : > { %3276 = vmatprep.subr.bf16.mxu1 %v3901_v0 }
 0x356   : > { %3278 = vmatpush3.bf16.msra.mxu1 %v4162_v12 }
 0x357   : > { %3285 = vmatprep.subr.bf16.mxu1 %v3901_v0 }
 0x424   : > { %v1018_v31 = vpop.f32.mrb[6].mxu1 }
 0x425   : > { %v1023_v33 = vrot.slane %v1018_v31, 5  ;;  %v1024_v34 = vrot.slane %v1018_v31, 6  ;;  %v1025_v35 = vrot.slane %v1018_v31, 7  ;;  %v1026_v36 = vrot.slane %v1018_v31, 1  ;;  %v3106_v37 = vpop.f32.mrb[7].mxu1 }
 0x426   : > { %v1027_v38 = vrot.slane %v1018_v31, 2  ;;  %v1028_v41 = vrot.slane %v1018_v31, 3  ;;  %v1041_v42 = vadd.f32 %v1018_v31, %v4246_v52  ;;  %v1029_v43 = vrot.slane %v1018_v31, 4 }
 0x427   : > { %v1038_v45 = vadd.f32 %v1023_v33, %v4219_v32  ;;  %v1039_v47 = vadd.f32 %v1024_v34, %v4230_v40  ;;  %v1040_v48 = vadd.f32 %v1025_v35, %v4238_v46  ;;  %v1042_v49 = vadd.f32 %v1026_v36, %v4254_v59 }
 0x428   : > { %3482 = vtanh.f32 %v1041_v42  ;;  %v1043_v51 = vadd.f32 %v1027_v38, %v4270_v4  ;;  %v1044_v53 = vadd.f32 %v1028_v41, %v4280_v13  ;;  %v1045_v54 = vadd.f32 %v1029_v43, %v4290_v20 }
 0x429   : > { %3484 = vtanh.f32 %v1038_v45 }
 0x42a   : > { %3486 = vtanh.f32 %v1039_v47 }
 0x42b   : > { %3488 = vtanh.f32 %v1040_v48 }
 0x42c   : > { %3490 = vtanh.f32 %v1042_v49 }
 0x42d   : > { %3492 = vtanh.f32 %v1043_v51 }
 0x42e   : > { %3494 = vtanh.f32 %v1044_v53 }
 0x42f   : > { %3496 = vtanh.f32 %v1045_v54 }
 0x432   : > { %v3483_v55 = vpop.eup %3482 }
 0x433   : > { %v3485_v57 = vpop.eup %3484  ;;  %1058 = vst.msk [vmem:[%s4258_s30 + $0x30] sm:$0x8] %vm1054_vm13, %v3483_v55 }
 0x434   : > { %v3487_v58 = vpop.eup %3486  ;;  %1055 = vst.msk [vmem:[%s4258_s30] sm:$0x8] %vm1054_vm13, %v3485_v57  ;;  %v1071_v60 = vrot.slane %v3485_v57, 3 }
 0x435   : > { %v3489_v61 = vpop.eup %3488  ;;  %1056 = vst.msk [vmem:[%s4258_s30 + $0x10] sm:$0x8] %vm1054_vm13, %v3487_v58  ;;  %v1072_v62 = vrot.slane %v3487_v58, 2 }
 0x436   : > { %v3491_v63 = vpop.eup %3490  ;;  %1057 = vst.msk [vmem:[%s4258_s30 + $0x20] sm:$0x8] %vm1054_vm13, %v3489_v61  ;;  %v1074_v3 = vrot.slane %v3489_v61, 1 }
 0x437   : > { %v3493_v5 = vpop.eup %3492  ;;  %1059 = vst.msk [vmem:[%s4258_s30 + $0x40] sm:$0x8] %vm1054_vm13, %v3491_v63  ;;  %v1073_v6 = vsel %vm660_vm4, %v1072_v62, %v1071_v60  ;;  %v1077_v11 = vrot.slane %v3491_v63, 7 }
 0x438   : > { %v3495_v7 = vpop.eup %3494  ;;  %1060 = vst.msk [vmem:[%s4258_s30 + $0x50] sm:$0x8] %vm1054_vm13, %v3493_v5  ;;  %v1075_v10 = vsel %vm663_vm5, %v1074_v3, %v1073_v6  ;;  %v1079_v16 = vrot.slane %v3493_v5, 6 }
 0x439   : > { %v3497_v14 = vpop.eup %3496  ;;  %1061 = vst.msk [vmem:[%s4258_s30 + $0x60] sm:$0x8] %vm1054_vm13, %v3495_v7  ;;  %v1076_v15 = vsel %vm666_vm6, %v3483_v55, %v1075_v10  ;;  %v1081_v19 = vrot.slane %v3495_v7, 5 }
 0x43a   : > { %1062 = vst.msk [vmem:[%s4258_s30 + $0x70] sm:$0x8] %vm1054_vm13, %v3497_v14  ;;  %v1078_v18 = vsel %vm669_vm7, %v1077_v11, %v1076_v15  ;;  %v1083_v22 = vrot.slane %v3497_v14, 4 }
 0x43b   : > { %v1080_v21 = vsel %vm672_vm8, %v1079_v16, %v1078_v18 }
 0x43c   : > { %v1082_v23 = vsel %vm675_vm9, %v1081_v19, %v1080_v21 }
 0x43d   : > { %v1084_v24 = vsel %vm678_vm10, %v1083_v22, %v1082_v23 }
 0x43e   : > { %3116 = vmatmul.mubr.msk.f32.vlgmr.msra.gmra.mrb[16].mxu0 %vm310_vm1, %v1084_v24 }
 0x43f   : > { %3281 = vmatpush3.bf16.msra.mxu0 %v4157_v8  ;;  %3137 = vmatprep.mubr.msk.f32.mxu0 %vm3902_vm0, %v3903_v1 }
 0x440   : > { %3282 = vmatprep.subr.bf16.mxu0 %v3901_v0 }
 0x443   : > { %3284 = vmatpush3.bf16.msra.mxu0 %v4162_v12 }
 0x444   : > { %3291 = vmatprep.subr.bf16.mxu0 %v3901_v0 }
 0x511   : > { %v1153_v25 = vpop.f32.mrb[16].mxu0 }
 0x512   : > { %v1158_v26 = vrot.slane %v1153_v25, 4  ;;  %v1159_v27 = vrot.slane %v1153_v25, 5  ;;  %v1160_v28 = vrot.slane %v1153_v25, 6  ;;  %v1161_v29 = vrot.slane %v1153_v25, 7  ;;  %v3117_v31 = vpop.f32.mrb[17].mxu0 }
 0x513   : > { %v1162_v33 = vrot.slane %v1153_v25, 1  ;;  %v1163_v34 = vrot.slane %v1153_v25, 2  ;;  %v1177_v35 = vadd.f32 %v1153_v25, %v4254_v59  ;;  %v1164_v36 = vrot.slane %v1153_v25, 3 }
 0x514   : > { %v1173_v37 = vadd.f32 %v1158_v26, %v4219_v32  ;;  %v1174_v38 = vadd.f32 %v1159_v27, %v4230_v40  ;;  %v1175_v41 = vadd.f32 %v1160_v28, %v4238_v46  ;;  %v1176_v42 = vadd.f32 %v1161_v29, %v4246_v52 }
 0x515   : > { %3498 = vtanh.f32 %v1177_v35  ;;  %v1178_v43 = vadd.f32 %v1162_v33, %v4270_v4  ;;  %v1179_v45 = vadd.f32 %v1163_v34, %v4280_v13  ;;  %v1180_v47 = vadd.f32 %v1164_v36, %v4290_v20 }
 0x516   : > { %3500 = vtanh.f32 %v1173_v37 }
 0x517   : > { %3502 = vtanh.f32 %v1174_v38 }
 0x518   : > { %3504 = vtanh.f32 %v1175_v41 }
 0x519   : > { %3506 = vtanh.f32 %v1176_v42 }
 0x51a   : > { %3508 = vtanh.f32 %v1178_v43 }
 0x51b   : > { %3510 = vtanh.f32 %v1179_v45 }
 0x51c   : > { %3512 = vtanh.f32 %v1180_v47 }
 0x51f   : > { %v3499_v48 = vpop.eup %3498 }
 0x520   : > { %v3501_v49 = vpop.eup %3500  ;;  %1194 = vst.msk [vmem:[%s4258_s30 + $0x40] sm:$0x10] %vm1189_vm14, %v3499_v48 }
 0x521   : > { %v3503_v51 = vpop.eup %3502  ;;  %1190 = vst.msk [vmem:[%s4258_s30] sm:$0x10] %vm1189_vm14, %v3501_v49  ;;  %v1206_v53 = vrot.slane %v3501_v49, 4 }
 0x522   : > { %v3505_v54 = vpop.eup %3504  ;;  %1191 = vst.msk [vmem:[%s4258_s30 + $0x10] sm:$0x10] %vm1189_vm14, %v3503_v51  ;;  %v1207_v55 = vrot.slane %v3503_v51, 3 }
 0x523   : > { %v3507_v57 = vpop.eup %3506  ;;  %1192 = vst.msk [vmem:[%s4258_s30 + $0x20] sm:$0x10] %vm1189_vm14, %v3505_v54  ;;  %v1209_v58 = vrot.slane %v3505_v54, 2 }
 0x524   : > { %v3509_v60 = vpop.eup %3508  ;;  %1193 = vst.msk [vmem:[%s4258_s30 + $0x30] sm:$0x10] %vm1189_vm14, %v3507_v57  ;;  %v1208_v61 = vsel %vm660_vm4, %v1207_v55, %v1206_v53  ;;  %v1211_v62 = vrot.slane %v3507_v57, 1 }
 0x525   : > { %v3511_v63 = vpop.eup %3510  ;;  %1195 = vst.msk [vmem:[%s4258_s30 + $0x50] sm:$0x10] %vm1189_vm14, %v3509_v60  ;;  %v1210_v3 = vsel %vm663_vm5, %v1209_v58, %v1208_v61  ;;  %v1214_v7 = vrot.slane %v3509_v60, 7 }
 0x526   : > { %v3513_v5 = vpop.eup %3512  ;;  %1196 = vst.msk [vmem:[%s4258_s30 + $0x60] sm:$0x10] %vm1189_vm14, %v3511_v63  ;;  %v1212_v6 = vsel %vm666_vm6, %v1211_v62, %v1210_v3  ;;  %v1216_v11 = vrot.slane %v3511_v63, 6 }
 0x527   : > { %1197 = vst.msk [vmem:[%s4258_s30 + $0x70] sm:$0x10] %vm1189_vm14, %v3513_v5  ;;  %v1213_v10 = vsel %vm669_vm7, %v3499_v48, %v1212_v6  ;;  %v1218_v15 = vrot.slane %v3513_v5, 5 }
 0x528   : > { %v1215_v14 = vsel %vm672_vm8, %v1214_v7, %v1213_v10 }
 0x529   : > { %v1217_v16 = vsel %vm675_vm9, %v1216_v11, %v1215_v14 }
 0x52a   : > { %v1219_v18 = vsel %vm678_vm10, %v1218_v15, %v1217_v16 }
 0x52b   : > { %3127 = vmatmul.mubr.msk.f32.vlgmr.msra.gmra.mrb[8].mxu1 %vm310_vm1, %v1219_v18 }
 0x52c   : > { %3287 = vmatpush3.bf16.msra.mxu1 %v4157_v8  ;;  %3148 = vmatprep.mubr.msk.f32.mxu1 %vm3902_vm0, %v3903_v1 }
 0x52d   : > { %3288 = vmatprep.subr.bf16.mxu1 %v3901_v0 }
 0x530   : > { %3290 = vmatpush3.bf16.msra.mxu1 %v4162_v12 }
 0x531   : > { %3297 = vmatprep.subr.bf16.mxu1 %v3901_v0 }
 0x5fe   : > { %v1288_v19 = vpop.f32.mrb[8].mxu1 }
 0x5ff   : > { %v1293_v21 = vrot.slane %v1288_v19, 3  ;;  %v1294_v22 = vrot.slane %v1288_v19, 4  ;;  %v1295_v23 = vrot.slane %v1288_v19, 5  ;;  %v1296_v24 = vrot.slane %v1288_v19, 6  ;;  %v3128_v25 = vpop.f32.mrb[9].mxu1 }
 0x600   : > { %v1297_v26 = vrot.slane %v1288_v19, 7  ;;  %v1298_v27 = vrot.slane %v1288_v19, 1  ;;  %v1313_v28 = vadd.f32 %v1288_v19, %v4270_v4  ;;  %v1299_v29 = vrot.slane %v1288_v19, 2 }
 0x601   : > { %v1308_v31 = vadd.f32 %v1293_v21, %v4219_v32  ;;  %v1309_v33 = vadd.f32 %v1294_v22, %v4230_v40  ;;  %v1310_v34 = vadd.f32 %v1295_v23, %v4238_v46  ;;  %v1311_v35 = vadd.f32 %v1296_v24, %v4246_v52 }
 0x602   : > { %3514 = vtanh.f32 %v1313_v28  ;;  %v1312_v36 = vadd.f32 %v1297_v26, %v4254_v59  ;;  %v1314_v37 = vadd.f32 %v1298_v27, %v4280_v13  ;;  %v1315_v38 = vadd.f32 %v1299_v29, %v4290_v20 }
 0x603   : > { %3516 = vtanh.f32 %v1308_v31 }
 0x604   : > { %3518 = vtanh.f32 %v1309_v33 }
 0x605   : > { %3520 = vtanh.f32 %v1310_v34 }
 0x606   : > { %3522 = vtanh.f32 %v1311_v35 }
 0x607   : > { %3524 = vtanh.f32 %v1312_v36 }
 0x608   : > { %3526 = vtanh.f32 %v1314_v37 }
 0x609   : > { %3528 = vtanh.f32 %v1315_v38 }
 0x60c   : > { %v3515_v41 = vpop.eup %3514 }
 0x60d   : > { %v3517_v42 = vpop.eup %3516  ;;  %1330 = vst.msk [vmem:[%s4258_s30 + $0x50] sm:$0x20] %vm1324_vm15, %v3515_v41 }
 0x60e   : > { %v3519_v43 = vpop.eup %3518  ;;  %1325 = vst.msk [vmem:[%s4258_s30] sm:$0x20] %vm1324_vm15, %v3517_v42  ;;  %v1341_v45 = vrot.slane %v3517_v42, 5 }
 0x60f   : > { %v3521_v47 = vpop.eup %3520  ;;  %1326 = vst.msk [vmem:[%s4258_s30 + $0x10] sm:$0x20] %vm1324_vm15, %v3519_v43  ;;  %v1342_v48 = vrot.slane %v3519_v43, 4 }
 0x610   : > { %v3523_v49 = vpop.eup %3522  ;;  %1327 = vst.msk [vmem:[%s4258_s30 + $0x20] sm:$0x20] %vm1324_vm15, %v3521_v47  ;;  %v1344_v51 = vrot.slane %v3521_v47, 3 }
 0x611   : > { %v3525_v53 = vpop.eup %3524  ;;  %1328 = vst.msk [vmem:[%s4258_s30 + $0x30] sm:$0x20] %vm1324_vm15, %v3523_v49  ;;  %v1343_v54 = vsel %vm660_vm4, %v1342_v48, %v1341_v45  ;;  %v1346_v55 = vrot.slane %v3523_v49, 2 }
 0x612   : > { %v3527_v57 = vpop.eup %3526  ;;  %1329 = vst.msk [vmem:[%s4258_s30 + $0x40] sm:$0x20] %vm1324_vm15, %v3525_v53  ;;  %v1345_v58 = vsel %vm663_vm5, %v1344_v51, %v1343_v54  ;;  %v1348_v60 = vrot.slane %v3525_v53, 1 }
 0x613   : > { %v3529_v61 = vpop.eup %3528  ;;  %1331 = vst.msk [vmem:[%s4258_s30 + $0x60] sm:$0x20] %vm1324_vm15, %v3527_v57  ;;  %v1347_v62 = vsel %vm666_vm6, %v1346_v55, %v1345_v58  ;;  %v1351_v3 = vrot.slane %v3527_v57, 7 }
 0x614   : > { %1332 = vst.msk [vmem:[%s4258_s30 + $0x70] sm:$0x20] %vm1324_vm15, %v3529_v61  ;;  %v1349_v63 = vsel %vm669_vm7, %v1348_v60, %v1347_v62  ;;  %v1353_v6 = vrot.slane %v3529_v61, 6 }
 0x615   : > { %v1350_v5 = vsel %vm672_vm8, %v3515_v41, %v1349_v63 }
 0x616   : > { %v1352_v7 = vsel %vm675_vm9, %v1351_v3, %v1350_v5 }
 0x617   : > { %v1354_v10 = vsel %vm678_vm10, %v1353_v6, %v1352_v7 }
 0x618   : > { %3138 = vmatmul.mubr.msk.f32.vlgmr.msra.gmra.mrb[18].mxu0 %vm310_vm1, %v1354_v10 }
 0x619   : > { %3293 = vmatpush3.bf16.msra.mxu0 %v4157_v8  ;;  %3159 = vmatprep.mubr.msk.f32.mxu0 %vm3902_vm0, %v3903_v1 }
 0x61a   : > { %3294 = vmatprep.subr.bf16.mxu0 %v3901_v0 }
 0x61d   : > { %3296 = vmatpush3.bf16.msra.mxu0 %v4162_v12 }
 0x61e   : > { %3303 = vmatprep.subr.bf16.mxu0 %v3901_v0 }
 0x6eb   : > { %v1423_v11 = vpop.f32.mrb[18].mxu0 }
 0x6ec   : > { %v1428_v14 = vrot.slane %v1423_v11, 2  ;;  %v1429_v15 = vrot.slane %v1423_v11, 3  ;;  %v1430_v16 = vrot.slane %v1423_v11, 4  ;;  %v1431_v18 = vrot.slane %v1423_v11, 5  ;;  %v3139_v19 = vpop.f32.mrb[19].mxu0 }
 0x6ed   : > { %v1432_v21 = vrot.slane %v1423_v11, 6  ;;  %v1433_v22 = vrot.slane %v1423_v11, 7  ;;  %v1449_v23 = vadd.f32 %v1423_v11, %v4280_v13  ;;  %v1434_v24 = vrot.slane %v1423_v11, 1 }
 0x6ee   : > { %v1443_v25 = vadd.f32 %v1428_v14, %v4219_v32  ;;  %v1444_v26 = vadd.f32 %v1429_v15, %v4230_v40  ;;  %v1445_v27 = vadd.f32 %v1430_v16, %v4238_v46  ;;  %v1446_v28 = vadd.f32 %v1431_v18, %v4246_v52 }
 0x6ef   : > { %3530 = vtanh.f32 %v1449_v23  ;;  %v1447_v29 = vadd.f32 %v1432_v21, %v4254_v59  ;;  %v1448_v31 = vadd.f32 %v1433_v22, %v4270_v4  ;;  %v1450_v33 = vadd.f32 %v1434_v24, %v4290_v20 }
 0x6f0   : > { %3532 = vtanh.f32 %v1443_v25 }
 0x6f1   : > { %3534 = vtanh.f32 %v1444_v26 }
 0x6f2   : > { %3536 = vtanh.f32 %v1445_v27 }
 0x6f3   : > { %3538 = vtanh.f32 %v1446_v28 }
 0x6f4   : > { %3540 = vtanh.f32 %v1447_v29 }
 0x6f5   : > { %3542 = vtanh.f32 %v1448_v31 }
 0x6f6   : > { %3544 = vtanh.f32 %v1450_v33 }
 0x6f9   : > { %v3531_v34 = vpop.eup %3530 }
 0x6fa   : > { %v3533_v35 = vpop.eup %3532  ;;  %1466 = vst.msk [vmem:[%s4258_s30 + $0x60] sm:$0x40] %vm4976_vm2, %v3531_v34 }
 0x6fb   : > { %v3535_v36 = vpop.eup %3534  ;;  %1460 = vst.msk [vmem:[%s4258_s30] sm:$0x40] %vm4976_vm2, %v3533_v35  ;;  %v1476_v37 = vrot.slane %v3533_v35, 6 }
 0x6fc   : > { %v3537_v38 = vpop.eup %3536  ;;  %1461 = vst.msk [vmem:[%s4258_s30 + $0x10] sm:$0x40] %vm4976_vm2, %v3535_v36  ;;  %v1477_v41 = vrot.slane %v3535_v36, 5 }
 0x6fd   : > { %v3539_v42 = vpop.eup %3538  ;;  %1462 = vst.msk [vmem:[%s4258_s30 + $0x20] sm:$0x40] %vm4976_vm2, %v3537_v38  ;;  %v1479_v43 = vrot.slane %v3537_v38, 4 }
 0x6fe   : > { %v3541_v45 = vpop.eup %3540  ;;  %1463 = vst.msk [vmem:[%s4258_s30 + $0x30] sm:$0x40] %vm4976_vm2, %v3539_v42  ;;  %v1478_v47 = vsel %vm660_vm4, %v1477_v41, %v1476_v37  ;;  %v1481_v48 = vrot.slane %v3539_v42, 3 }
 0x6ff   : > { %v3543_v49 = vpop.eup %3542  ;;  %1464 = vst.msk [vmem:[%s4258_s30 + $0x40] sm:$0x40] %vm4976_vm2, %v3541_v45  ;;  %v1480_v51 = vsel %vm663_vm5, %v1479_v43, %v1478_v47  ;;  %v1483_v53 = vrot.slane %v3541_v45, 2 }
 0x700   : > { %v3545_v54 = vpop.eup %3544  ;;  %1465 = vst.msk [vmem:[%s4258_s30 + $0x50] sm:$0x40] %vm4976_vm2, %v3543_v49  ;;  %v1482_v55 = vsel %vm666_vm6, %v1481_v48, %v1480_v51  ;;  %v1485_v57 = vrot.slane %v3543_v49, 1 }
 0x701   : > { %1467 = vst.msk [vmem:[%s4258_s30 + $0x70] sm:$0x40] %vm4976_vm2, %v3545_v54  ;;  %v1484_v58 = vsel %vm669_vm7, %v1483_v53, %v1482_v55  ;;  %v1488_v61 = vrot.slane %v3545_v54, 7  ;;  %vm1594_vm2 = vcmask 261127  }
 0x702   : > { %v1486_v60 = vsel %vm672_vm8, %v1485_v57, %v1484_v58 }
 0x703   : > { %v1487_v62 = vsel %vm675_vm9, %v3531_v34, %v1486_v60 }
 0x704   : > { %v1489_v63 = vsel %vm678_vm10, %v1488_v61, %v1487_v62 }
 0x705   : > { %3149 = vmatmul.mubr.msk.f32.vlgmr.msra.gmra.mrb[10].mxu1 %vm310_vm1, %v1489_v63 }
 0x706   : > { %3299 = vmatpush3.bf16.msra.mxu1 %v4157_v8  ;;  %3170 = vmatprep.mubr.msk.f32.mxu1 %vm3902_vm0, %v3903_v1 }
 0x707   : > { %3300 = vmatprep.subr.bf16.mxu1 %v3901_v0 }
 0x70a   : > { %3302 = vmatpush3.bf16.msra.mxu1 %v4162_v12 }
 0x70b   : > { %3309 = vmatprep.subr.bf16.mxu1 %v3901_v0 }
 0x7d8   : > { %v1558_v3 = vpop.f32.mrb[10].mxu1 }
 0x7d9   : > { %v1563_v5 = vrot.slane %v1558_v3, 1  ;;  %v1564_v6 = vrot.slane %v1558_v3, 2  ;;  %v1565_v7 = vrot.slane %v1558_v3, 3  ;;  %v1566_v10 = vrot.slane %v1558_v3, 4  ;;  %v3150_v11 = vpop.f32.mrb[11].mxu1 }
 0x7da   : > { %v1567_v14 = vrot.slane %v1558_v3, 5  ;;  %v1568_v15 = vrot.slane %v1558_v3, 6  ;;  %v1585_v16 = vadd.f32 %v1558_v3, %v4290_v20  ;;  %v1569_v18 = vrot.slane %v1558_v3, 7 }
 0x7db   : > { %v1578_v19 = vadd.f32 %v1563_v5, %v4219_v32  ;;  %v1579_v21 = vadd.f32 %v1564_v6, %v4230_v40  ;;  %v1580_v22 = vadd.f32 %v1565_v7, %v4238_v46  ;;  %v1581_v23 = vadd.f32 %v1566_v10, %v4246_v52 }
 0x7dc   : > { %3546 = vtanh.f32 %v1585_v16  ;;  %v1582_v24 = vadd.f32 %v1567_v14, %v4254_v59  ;;  %v1583_v25 = vadd.f32 %v1568_v15, %v4270_v4  ;;  %v1584_v20 = vadd.f32 %v1569_v18, %v4280_v13 }
 0x7dd   : > { %3548 = vtanh.f32 %v1578_v19 }
 0x7de   : > { %3550 = vtanh.f32 %v1579_v21 }
 0x7df   : > { %3552 = vtanh.f32 %v1580_v22 }
 0x7e0   : > { %3554 = vtanh.f32 %v1581_v23 }
 0x7e1   : > { %3556 = vtanh.f32 %v1582_v24 }
 0x7e2   : > { %3558 = vtanh.f32 %v1583_v25 }
 0x7e3   : > { %3560 = vtanh.f32 %v1584_v20 }
 0x7e6   : > { %v3547_v32 = vpop.eup %3546 }
 0x7e7   : > { %v3549_v40 = vpop.eup %3548  ;;  %1602 = vst.msk [vmem:[%s4258_s30 + $0x70] sm:$0x80] %vm1594_vm2, %v3547_v32 }
 0x7e8   : > { %v3551_v46 = vpop.eup %3550  ;;  %1595 = vst.msk [vmem:[%s4258_s30] sm:$0x80] %vm1594_vm2, %v3549_v40  ;;  %v1611_v52 = vrot.slane %v3549_v40, 7 }
 0x7e9   : > { %v3553_v59 = vpop.eup %3552  ;;  %1596 = vst.msk [vmem:[%s4258_s30 + $0x10] sm:$0x80] %vm1594_vm2, %v3551_v46  ;;  %v1612_v4 = vrot.slane %v3551_v46, 6 }
 0x7ea   : > { %v3555_v13 = vpop.eup %3554  ;;  %1597 = vst.msk [vmem:[%s4258_s30 + $0x20] sm:$0x80] %vm1594_vm2, %v3553_v59  ;;  %v1614_v26 = vrot.slane %v3553_v59, 5 }
 0x7eb   : > { %v3557_v27 = vpop.eup %3556  ;;  %1598 = vst.msk [vmem:[%s4258_s30 + $0x30] sm:$0x80] %vm1594_vm2, %v3555_v13  ;;  %v1613_v28 = vsel %vm660_vm4, %v1612_v4, %v1611_v52  ;;  %v1616_v29 = vrot.slane %v3555_v13, 4 }
 0x7ec   : > { %v3559_v31 = vpop.eup %3558  ;;  %1599 = vst.msk [vmem:[%s4258_s30 + $0x40] sm:$0x80] %vm1594_vm2, %v3557_v27  ;;  %v1615_v33 = vsel %vm663_vm5, %v1614_v26, %v1613_v28  ;;  %v1618_v34 = vrot.slane %v3557_v27, 3 }
 0x7ed   : > { %v3561_v35 = vpop.eup %3560  ;;  %1600 = vst.msk [vmem:[%s4258_s30 + $0x50] sm:$0x80] %vm1594_vm2, %v3559_v31  ;;  %v1617_v36 = vsel %vm666_vm6, %v1616_v29, %v1615_v33  ;;  %v1620_v37 = vrot.slane %v3559_v31, 2 }
 0x7ee   : > { %1601 = vst.msk [vmem:[%s4258_s30 + $0x60] sm:$0x80] %vm1594_vm2, %v3561_v35  ;;  %v1619_v38 = vsel %vm669_vm7, %v1618_v34, %v1617_v36  ;;  %v1622_v41 = vrot.slane %v3561_v35, 1 }
 0x7ef   : > { %v1621_v42 = vsel %vm672_vm8, %v1620_v37, %v1619_v38 }
 0x7f0   : > { %v1623_v43 = vsel %vm675_vm9, %v1622_v41, %v1621_v42 }
 0x7f1   : > { %v1624_v45 = vsel %vm678_vm10, %v3547_v32, %v1623_v43 }
 0x7f2   : > { %3160 = vmatmul.mubr.msk.f32.vlgmr.msra.gmra.mrb[20].mxu0 %vm310_vm1, %v1624_v45 }
 0x7f3   : > { %3305 = vmatpush3.bf16.msra.mxu0 %v4157_v8  ;;  %3181 = vmatprep.mubr.msk.f32.mxu0 %vm3902_vm0, %v3903_v1 }
 0x7f4   : > { %3306 = vmatprep.subr.bf16.mxu0 %v3901_v0 }
 0x7f7   : > { %3308 = vmatpush3.bf16.msra.mxu0 %v4162_v12 }
 0x7f8   : > { %3315 = vmatprep.subr.bf16.mxu0 %v3901_v0 }
 0x8c5   : > { %v1693_v47 = vpop.f32.mrb[20].mxu0 }
 0x8c6   : > { %v1698_v48 = vrot.slane %v1693_v47, 1  ;;  %v1699_v49 = vrot.slane %v1693_v47, 2  ;;  %v1700_v51 = vrot.slane %v1693_v47, 3  ;;  %v1701_v53 = vrot.slane %v1693_v47, 4  ;;  %v3161_v54 = vpop.f32.mrb[21].mxu0 }
 0x8c7   : > { %v1702_v55 = vrot.slane %v1693_v47, 5  ;;  %v1703_v57 = vrot.slane %v1693_v47, 6  ;;  %v1713_v58 = vadd.f32 %v1693_v47, %v4216_v30  ;;  %v1704_v60 = vrot.slane %v1693_v47, 7 }
 0x8c8   : > { %v1714_v61 = vadd.f32 %v1698_v48, %v4227_v39  ;;  %v1715_v62 = vadd.f32 %v1699_v49, %v4235_v44  ;;  %v1716_v63 = vadd.f32 %v1700_v51, %v4243_v50  ;;  %v1717_v3 = vadd.f32 %v1701_v53, %v4251_v56 }
 0x8c9   : > { %3562 = vtanh.f32 %v1713_v58  ;;  %v1718_v5 = vadd.f32 %v1702_v55, %v4265_v2  ;;  %v1719_v6 = vadd.f32 %v1703_v57, %v4274_v9  ;;  %v1720_v7 = vadd.f32 %v1704_v60, %v4284_v17 }
 0x8ca   : > { %3564 = vtanh.f32 %v1714_v61 }
 0x8cb   : > { %3566 = vtanh.f32 %v1715_v62 }
 0x8cc   : > { %3568 = vtanh.f32 %v1716_v63 }
 0x8cd   : > { %3570 = vtanh.f32 %v1717_v3 }
 0x8ce   : > { %3572 = vtanh.f32 %v1718_v5 }
 0x8cf   : > { %3574 = vtanh.f32 %v1719_v6 }
 0x8d0   : > { %3576 = vtanh.f32 %v1720_v7 }
 0x8d3   : > { %v3563_v10 = vpop.eup %3562 }
 0x8d4   : > { %v3565_v11 = vpop.eup %3564  ;;  %1729 = vst.msk [vmem:[%s4258_s30 + $0x8] sm:$0x1] %vm642_vm3, %v3563_v10 }
 0x8d5   : > { %v3567_v14 = vpop.eup %3566  ;;  %1730 = vst.msk [vmem:[%s4258_s30 + $0x18] sm:$0x1] %vm642_vm3, %v3565_v11  ;;  %v1745_v15 = vrot.slane %v3565_v11, 7 }
 0x8d6   : > { %v3569_v16 = vpop.eup %3568  ;;  %1731 = vst.msk [vmem:[%s4258_s30 + $0x28] sm:$0x1] %vm642_vm3, %v3567_v14  ;;  %v1747_v18 = vrot.slane %v3567_v14, 6 }
 0x8d7   : > { %v3571_v19 = vpop.eup %3570  ;;  %1732 = vst.msk [vmem:[%s4258_s30 + $0x38] sm:$0x1] %vm642_vm3, %v3569_v16  ;;  %v1746_v21 = vsel %vm660_vm4, %v1745_v15, %v3563_v10  ;;  %v1749_v22 = vrot.slane %v3569_v16, 5 }
 0x8d8   : > { %v3573_v23 = vpop.eup %3572  ;;  %1733 = vst.msk [vmem:[%s4258_s30 + $0x48] sm:$0x1] %vm642_vm3, %v3571_v19  ;;  %v1748_v24 = vsel %vm663_vm5, %v1747_v18, %v1746_v21  ;;  %v1751_v25 = vrot.slane %v3571_v19, 4 }
 0x8d9   : > { %v3575_v20 = vpop.eup %3574  ;;  %1734 = vst.msk [vmem:[%s4258_s30 + $0x58] sm:$0x1] %vm642_vm3, %v3573_v23  ;;  %v1750_v32 = vsel %vm666_vm6, %v1749_v22, %v1748_v24  ;;  %v1753_v40 = vrot.slane %v3573_v23, 3 }
 0x8da   : > { %v3577_v46 = vpop.eup %3576  ;;  %1735 = vst.msk [vmem:[%s4258_s30 + $0x68] sm:$0x1] %vm642_vm3, %v3575_v20  ;;  %v1752_v52 = vsel %vm669_vm7, %v1751_v25, %v1750_v32  ;;  %v1755_v59 = vrot.slane %v3575_v20, 2 }
 0x8db   : > { %1736 = vst.msk [vmem:[%s4258_s30 + $0x78] sm:$0x1] %vm642_vm3, %v3577_v46  ;;  %v1754_v4 = vsel %vm672_vm8, %v1753_v40, %v1752_v52  ;;  %v1757_v13 = vrot.slane %v3577_v46, 1 }
 0x8dc   : > { %v1756_v26 = vsel %vm675_vm9, %v1755_v59, %v1754_v4 }
 0x8dd   : > { %v1758_v27 = vsel %vm678_vm10, %v1757_v13, %v1756_v26 }
 0x8de   : > { %3171 = vmatmul.mubr.msk.f32.vlgmr.msra.gmra.mrb[12].mxu1 %vm310_vm1, %v1758_v27 }
 0x8df   : > { %3311 = vmatpush3.bf16.msra.mxu1 %v4157_v8  ;;  %3192 = vmatprep.mubr.msk.f32.mxu1 %vm3902_vm0, %v3903_v1 }
 0x8e0   : > { %3312 = vmatprep.subr.bf16.mxu1 %v3901_v0 }
 0x8e3   : > { %3314 = vmatpush3.bf16.msra.mxu1 %v4162_v12 }
 0x8e4   : > { %3321 = vmatprep.subr.bf16.mxu1 %v3901_v0 }
 0x9b1   : > { %v1827_v28 = vpop.f32.mrb[12].mxu1 }
 0x9b2   : > { %v1832_v29 = vrot.slane %v1827_v28, 7  ;;  %v1833_v31 = vrot.slane %v1827_v28, 1  ;;  %v1834_v33 = vrot.slane %v1827_v28, 2  ;;  %v1835_v34 = vrot.slane %v1827_v28, 3  ;;  %v3172_v35 = vpop.f32.mrb[13].mxu1 }
 0x9b3   : > { %v1836_v36 = vrot.slane %v1827_v28, 4  ;;  %v1837_v37 = vrot.slane %v1827_v28, 5  ;;  %v1848_v38 = vadd.f32 %v1827_v28, %v4227_v39  ;;  %v1838_v41 = vrot.slane %v1827_v28, 6 }
 0x9b4   : > { %v1847_v42 = vadd.f32 %v1832_v29, %v4216_v30  ;;  %v1849_v43 = vadd.f32 %v1833_v31, %v4235_v44  ;;  %v1850_v45 = vadd.f32 %v1834_v33, %v4243_v50  ;;  %v1851_v47 = vadd.f32 %v1835_v34, %v4251_v56 }
 0x9b5   : > { %3578 = vtanh.f32 %v1848_v38  ;;  %v1852_v48 = vadd.f32 %v1836_v36, %v4265_v2  ;;  %v1853_v49 = vadd.f32 %v1837_v37, %v4274_v9  ;;  %v1854_v51 = vadd.f32 %v1838_v41, %v4284_v17 }
 0x9b6   : > { %3580 = vtanh.f32 %v1847_v42 }
 0x9b7   : > { %3582 = vtanh.f32 %v1849_v43 }
 0x9b8   : > { %3584 = vtanh.f32 %v1850_v45 }
 0x9b9   : > { %3586 = vtanh.f32 %v1851_v47 }
 0x9ba   : > { %3588 = vtanh.f32 %v1852_v48 }
 0x9bb   : > { %3590 = vtanh.f32 %v1853_v49 }
 0x9bc   : > { %3592 = vtanh.f32 %v1854_v51 }
 0x9bf   : > { %v3579_v53 = vpop.eup %3578 }
 0x9c0   : > { %v3581_v54 = vpop.eup %3580  ;;  %1864 = vst.msk [vmem:[%s4258_s30 + $0x18] sm:$0x2] %vm784_vm11, %v3579_v53 }
 0x9c1   : > { %v3583_v55 = vpop.eup %3582  ;;  %1863 = vst.msk [vmem:[%s4258_s30 + $0x8] sm:$0x2] %vm784_vm11, %v3581_v54  ;;  %v1879_v57 = vrot.slane %v3581_v54, 1 }
 0x9c2   : > { %v3585_v58 = vpop.eup %3584  ;;  %1865 = vst.msk [vmem:[%s4258_s30 + $0x28] sm:$0x2] %vm784_vm11, %v3583_v55  ;;  %v1881_v60 = vrot.slane %v3583_v55, 7 }
 0x9c3   : > { %v3587_v61 = vpop.eup %3586  ;;  %1866 = vst.msk [vmem:[%s4258_s30 + $0x38] sm:$0x2] %vm784_vm11, %v3585_v58  ;;  %v1880_v62 = vsel %vm660_vm4, %v3579_v53, %v1879_v57  ;;  %v1883_v63 = vrot.slane %v3585_v58, 6 }
 0x9c4   : > { %v3589_v3 = vpop.eup %3588  ;;  %1867 = vst.msk [vmem:[%s4258_s30 + $0x48] sm:$0x2] %vm784_vm11, %v3587_v61  ;;  %v1882_v5 = vsel %vm663_vm5, %v1881_v60, %v1880_v62  ;;  %v1885_v6 = vrot.slane %v3587_v61, 5 }
 0x9c5   : > { %v3591_v7 = vpop.eup %3590  ;;  %1868 = vst.msk [vmem:[%s4258_s30 + $0x58] sm:$0x2] %vm784_vm11, %v3589_v3  ;;  %v1884_v10 = vsel %vm666_vm6, %v1883_v63, %v1882_v5  ;;  %v1887_v11 = vrot.slane %v3589_v3, 4 }
 0x9c6   : > { %v3593_v14 = vpop.eup %3592  ;;  %1869 = vst.msk [vmem:[%s4258_s30 + $0x68] sm:$0x2] %vm784_vm11, %v3591_v7  ;;  %v1886_v15 = vsel %vm669_vm7, %v1885_v6, %v1884_v10  ;;  %v1889_v16 = vrot.slane %v3591_v7, 3 }
 0x9c7   : > { %1870 = vst.msk [vmem:[%s4258_s30 + $0x78] sm:$0x2] %vm784_vm11, %v3593_v14  ;;  %v1888_v18 = vsel %vm672_vm8, %v1887_v11, %v1886_v15  ;;  %v1891_v19 = vrot.slane %v3593_v14, 2 }
 0x9c8   : > { %v1890_v21 = vsel %vm675_vm9, %v1889_v16, %v1888_v18 }
 0x9c9   : > { %v1892_v22 = vsel %vm678_vm10, %v1891_v19, %v1890_v21 }
 0x9ca   : > { %3182 = vmatmul.mubr.msk.f32.vlgmr.msra.gmra.mrb[22].mxu0 %vm310_vm1, %v1892_v22 }
 0x9cb   : > { %3317 = vmatpush3.bf16.msra.mxu0 %v4157_v8  ;;  %3203 = vmatprep.mubr.msk.f32.mxu0 %vm3902_vm0, %v3903_v1 }
 0x9cc   : > { %3318 = vmatprep.subr.bf16.mxu0 %v3901_v0 }
 0x9cf   : > { %3320 = vmatpush3.bf16.msra.mxu0 %v4162_v12 }
 0x9d0   : > { %3327 = vmatprep.subr.bf16.mxu0 %v3901_v0 }
 0xa9d   : > { %v1961_v23 = vpop.f32.mrb[22].mxu0 }
 0xa9e   : > { %v1966_v24 = vrot.slane %v1961_v23, 6  ;;  %v1967_v25 = vrot.slane %v1961_v23, 7  ;;  %v1968_v20 = vrot.slane %v1961_v23, 1  ;;  %v1969_v32 = vrot.slane %v1961_v23, 2  ;;  %v3183_v40 = vpop.f32.mrb[23].mxu0 }
 0xa9f   : > { %v1970_v46 = vrot.slane %v1961_v23, 3  ;;  %v1971_v52 = vrot.slane %v1961_v23, 4  ;;  %v1983_v59 = vadd.f32 %v1961_v23, %v4235_v44  ;;  %v1972_v4 = vrot.slane %v1961_v23, 5 }
 0xaa0   : > { %v1981_v13 = vadd.f32 %v1966_v24, %v4216_v30  ;;  %v1982_v26 = vadd.f32 %v1967_v25, %v4227_v39  ;;  %v1984_v27 = vadd.f32 %v1968_v20, %v4243_v50  ;;  %v1985_v28 = vadd.f32 %v1969_v32, %v4251_v56 }
 0xaa1   : > { %3594 = vtanh.f32 %v1983_v59  ;;  %v1986_v29 = vadd.f32 %v1970_v46, %v4265_v2  ;;  %v1987_v31 = vadd.f32 %v1971_v52, %v4274_v9  ;;  %v1988_v33 = vadd.f32 %v1972_v4, %v4284_v17 }
 0xaa2   : > { %3596 = vtanh.f32 %v1981_v13 }
 0xaa3   : > { %3598 = vtanh.f32 %v1982_v26 }
 0xaa4   : > { %3600 = vtanh.f32 %v1984_v27 }
 0xaa5   : > { %3602 = vtanh.f32 %v1985_v28 }
 0xaa6   : > { %3604 = vtanh.f32 %v1986_v29 }
 0xaa7   : > { %3606 = vtanh.f32 %v1987_v31 }
 0xaa8   : > { %3608 = vtanh.f32 %v1988_v33 }
 0xaab   : > { %v3595_v34 = vpop.eup %3594 }
 0xaac   : > { %v3597_v35 = vpop.eup %3596  ;;  %1999 = vst.msk [vmem:[%s4258_s30 + $0x28] sm:$0x4] %vm919_vm12, %v3595_v34 }
 0xaad   : > { %v3599_v36 = vpop.eup %3598  ;;  %1997 = vst.msk [vmem:[%s4258_s30 + $0x8] sm:$0x4] %vm919_vm12, %v3597_v35  ;;  %v2013_v37 = vrot.slane %v3597_v35, 2 }
 0xaae   : > { %v3601_v38 = vpop.eup %3600  ;;  %1998 = vst.msk [vmem:[%s4258_s30 + $0x18] sm:$0x4] %vm919_vm12, %v3599_v36  ;;  %v2014_v41 = vrot.slane %v3599_v36, 1 }
 0xaaf   : > { %v3603_v42 = vpop.eup %3602  ;;  %2000 = vst.msk [vmem:[%s4258_s30 + $0x38] sm:$0x4] %vm919_vm12, %v3601_v38  ;;  %v2017_v47 = vrot.slane %v3601_v38, 7 }
 0xab0   : > { %v3605_v43 = vpop.eup %3604  ;;  %2001 = vst.msk [vmem:[%s4258_s30 + $0x48] sm:$0x4] %vm919_vm12, %v3603_v42  ;;  %v2015_v45 = vsel %vm660_vm4, %v2014_v41, %v2013_v37  ;;  %v2019_v51 = vrot.slane %v3603_v42, 6 }
 0xab1   : > { %v3607_v48 = vpop.eup %3606  ;;  %2002 = vst.msk [vmem:[%s4258_s30 + $0x58] sm:$0x4] %vm919_vm12, %v3605_v43  ;;  %v2016_v49 = vsel %vm663_vm5, %v3595_v34, %v2015_v45  ;;  %v2021_v55 = vrot.slane %v3605_v43, 5 }
 0xab2   : > { %v3609_v53 = vpop.eup %3608  ;;  %2003 = vst.msk [vmem:[%s4258_s30 + $0x68] sm:$0x4] %vm919_vm12, %v3607_v48  ;;  %v2018_v54 = vsel %vm666_vm6, %v2017_v47, %v2016_v49  ;;  %v2023_v58 = vrot.slane %v3607_v48, 4 }
 0xab3   : > { %2004 = vst.msk [vmem:[%s4258_s30 + $0x78] sm:$0x4] %vm919_vm12, %v3609_v53  ;;  %v2020_v57 = vsel %vm669_vm7, %v2019_v51, %v2018_v54  ;;  %v2025_v61 = vrot.slane %v3609_v53, 3 }
 0xab4   : > { %v2022_v60 = vsel %vm672_vm8, %v2021_v55, %v2020_v57 }
 0xab5   : > { %v2024_v62 = vsel %vm675_vm9, %v2023_v58, %v2022_v60 }
 0xab6   : > { %v2026_v63 = vsel %vm678_vm10, %v2025_v61, %v2024_v62 }
 0xab7   : > { %3193 = vmatmul.mubr.msk.f32.vlgmr.msra.gmra.mrb[14].mxu1 %vm310_vm1, %v2026_v63 }
 0xab8   : > { %3323 = vmatpush3.bf16.msra.mxu1 %v4157_v8  ;;  %3214 = vmatprep.mubr.msk.f32.mxu1 %vm3902_vm0, %v3903_v1 }
 0xab9   : > { %3324 = vmatprep.subr.bf16.mxu1 %v3901_v0 }
 0xabc   : > { %3326 = vmatpush3.bf16.msra.mxu1 %v4162_v12 }
 0xabd   : > { %3333 = vmatprep.subr.bf16.mxu1 %v3901_v0 }
 0xb8a   : > { %v2095_v3 = vpop.f32.mrb[14].mxu1 }
 0xb8b   : > { %v2100_v5 = vrot.slane %v2095_v3, 5  ;;  %v2101_v6 = vrot.slane %v2095_v3, 6  ;;  %v2102_v7 = vrot.slane %v2095_v3, 7  ;;  %v2103_v10 = vrot.slane %v2095_v3, 1  ;;  %v3194_v11 = vpop.f32.mrb[15].mxu1 }
 0xb8c   : > { %v2104_v14 = vrot.slane %v2095_v3, 2  ;;  %v2105_v15 = vrot.slane %v2095_v3, 3  ;;  %v2118_v16 = vadd.f32 %v2095_v3, %v4243_v50  ;;  %v2106_v18 = vrot.slane %v2095_v3, 4 }
 0xb8d   : > { %v2115_v19 = vadd.f32 %v2100_v5, %v4216_v30  ;;  %v2116_v21 = vadd.f32 %v2101_v6, %v4227_v39  ;;  %v2117_v22 = vadd.f32 %v2102_v7, %v4235_v44  ;;  %v2119_v23 = vadd.f32 %v2103_v10, %v4251_v56 }
 0xb8e   : > { %3610 = vtanh.f32 %v2118_v16  ;;  %v2120_v24 = vadd.f32 %v2104_v14, %v4265_v2  ;;  %v2121_v25 = vadd.f32 %v2105_v15, %v4274_v9  ;;  %v2122_v20 = vadd.f32 %v2106_v18, %v4284_v17 }
 0xb8f   : > { %3612 = vtanh.f32 %v2115_v19 }
 0xb90   : > { %3614 = vtanh.f32 %v2116_v21 }
 0xb91   : > { %3616 = vtanh.f32 %v2117_v22 }
 0xb92   : > { %3618 = vtanh.f32 %v2119_v23 }
 0xb93   : > { %3620 = vtanh.f32 %v2120_v24 }
 0xb94   : > { %3622 = vtanh.f32 %v2121_v25 }
 0xb95   : > { %3624 = vtanh.f32 %v2122_v20 }
 0xb98   : > { %v3611_v32 = vpop.eup %3610 }
 0xb99   : > { %v3613_v40 = vpop.eup %3612  ;;  %2134 = vst.msk [vmem:[%s4258_s30 + $0x38] sm:$0x8] %vm1054_vm13, %v3611_v32 }
 0xb9a   : > { %v3615_v46 = vpop.eup %3614  ;;  %2131 = vst.msk [vmem:[%s4258_s30 + $0x8] sm:$0x8] %vm1054_vm13, %v3613_v40  ;;  %v2147_v52 = vrot.slane %v3613_v40, 3 }
 0xb9b   : > { %v3617_v59 = vpop.eup %3616  ;;  %2132 = vst.msk [vmem:[%s4258_s30 + $0x18] sm:$0x8] %vm1054_vm13, %v3615_v46  ;;  %v2148_v4 = vrot.slane %v3615_v46, 2 }
 0xb9c   : > { %v3619_v13 = vpop.eup %3618  ;;  %2133 = vst.msk [vmem:[%s4258_s30 + $0x28] sm:$0x8] %vm1054_vm13, %v3617_v59  ;;  %v2150_v26 = vrot.slane %v3617_v59, 1 }
 0xb9d   : > { %v3621_v27 = vpop.eup %3620  ;;  %2135 = vst.msk [vmem:[%s4258_s30 + $0x48] sm:$0x8] %vm1054_vm13, %v3619_v13  ;;  %v2149_v28 = vsel %vm660_vm4, %v2148_v4, %v2147_v52  ;;  %v2153_v33 = vrot.slane %v3619_v13, 7 }
 0xb9e   : > { %v3623_v29 = vpop.eup %3622  ;;  %2136 = vst.msk [vmem:[%s4258_s30 + $0x58] sm:$0x8] %vm1054_vm13, %v3621_v27  ;;  %v2151_v31 = vsel %vm663_vm5, %v2150_v26, %v2149_v28  ;;  %v2155_v36 = vrot.slane %v3621_v27, 6 }
 0xb9f   : > { %v3625_v34 = vpop.eup %3624  ;;  %2137 = vst.msk [vmem:[%s4258_s30 + $0x68] sm:$0x8] %vm1054_vm13, %v3623_v29  ;;  %v2152_v35 = vsel %vm666_vm6, %v3611_v32, %v2151_v31  ;;  %v2157_v38 = vrot.slane %v3623_v29, 5 }
 0xba0   : > { %2138 = vst.msk [vmem:[%s4258_s30 + $0x78] sm:$0x8] %vm1054_vm13, %v3625_v34  ;;  %v2154_v37 = vsel %vm669_vm7, %v2153_v33, %v2152_v35  ;;  %v2159_v42 = vrot.slane %v3625_v34, 4 }
 0xba1   : > { %v2156_v41 = vsel %vm672_vm8, %v2155_v36, %v2154_v37 }
 0xba2   : > { %v2158_v43 = vsel %vm675_vm9, %v2157_v38, %v2156_v41 }
 0xba3   : > { %v2160_v45 = vsel %vm678_vm10, %v2159_v42, %v2158_v43 }
 0xba4   : > { %3204 = vmatmul.mubr.msk.f32.vlgmr.msra.gmra.mrb[24].mxu0 %vm310_vm1, %v2160_v45 }
 0xba5   : > { %3329 = vmatpush3.bf16.msra.mxu0 %v4157_v8  ;;  %3225 = vmatprep.mubr.msk.f32.mxu0 %vm3902_vm0, %v3903_v1 }
 0xba6   : > { %3330 = vmatprep.subr.bf16.mxu0 %v3901_v0 }
 0xba9   : > { %3332 = vmatpush3.bf16.msra.mxu0 %v4162_v12 }
 0xc77   : > { %v2229_v47 = vpop.f32.mrb[24].mxu0 }
 0xc78   : > { %v2234_v48 = vrot.slane %v2229_v47, 4  ;;  %v2235_v49 = vrot.slane %v2229_v47, 5  ;;  %v2236_v51 = vrot.slane %v2229_v47, 6  ;;  %v2237_v53 = vrot.slane %v2229_v47, 7  ;;  %v3205_v54 = vpop.f32.mrb[25].mxu0 }
 0xc79   : > { %v2238_v55 = vrot.slane %v2229_v47, 1  ;;  %v2239_v57 = vrot.slane %v2229_v47, 2  ;;  %v2253_v58 = vadd.f32 %v2229_v47, %v4251_v56  ;;  %v2240_v60 = vrot.slane %v2229_v47, 3 }
 0xc7a   : > { %v2249_v61 = vadd.f32 %v2234_v48, %v4216_v30  ;;  %v2250_v62 = vadd.f32 %v2235_v49, %v4227_v39  ;;  %v2251_v63 = vadd.f32 %v2236_v51, %v4235_v44  ;;  %v2252_v3 = vadd.f32 %v2237_v53, %v4243_v50 }
 0xc7b   : > { %3626 = vtanh.f32 %v2253_v58  ;;  %v2254_v5 = vadd.f32 %v2238_v55, %v4265_v2  ;;  %v2255_v6 = vadd.f32 %v2239_v57, %v4274_v9  ;;  %v2256_v7 = vadd.f32 %v2240_v60, %v4284_v17 }
 0xc7c   : > { %3628 = vtanh.f32 %v2249_v61 }
 0xc7d   : > { %3630 = vtanh.f32 %v2250_v62 }
 0xc7e   : > { %3632 = vtanh.f32 %v2251_v63 }
 0xc7f   : > { %3634 = vtanh.f32 %v2252_v3 }
 0xc80   : > { %3636 = vtanh.f32 %v2254_v5 }
 0xc81   : > { %3638 = vtanh.f32 %v2255_v6 }
 0xc82   : > { %3640 = vtanh.f32 %v2256_v7 }
 0xc85   : > { %v3627_v10 = vpop.eup %3626 }
 0xc86   : > { %v3629_v11 = vpop.eup %3628  ;;  %2269 = vst.msk [vmem:[%s4258_s30 + $0x48] sm:$0x10] %vm1189_vm14, %v3627_v10 }
 0xc87   : > { %v3631_v14 = vpop.eup %3630  ;;  %2265 = vst.msk [vmem:[%s4258_s30 + $0x8] sm:$0x10] %vm1189_vm14, %v3629_v11  ;;  %v2281_v15 = vrot.slane %v3629_v11, 4 }
 0xc88   : > { %v3633_v16 = vpop.eup %3632  ;;  %2266 = vst.msk [vmem:[%s4258_s30 + $0x18] sm:$0x10] %vm1189_vm14, %v3631_v14  ;;  %v2282_v18 = vrot.slane %v3631_v14, 3 }
 0xc89   : > { %v3635_v19 = vpop.eup %3634  ;;  %2267 = vst.msk [vmem:[%s4258_s30 + $0x28] sm:$0x10] %vm1189_vm14, %v3633_v16  ;;  %v2284_v21 = vrot.slane %v3633_v16, 2 }
 0xc8a   : > { %v3637_v22 = vpop.eup %3636  ;;  %2268 = vst.msk [vmem:[%s4258_s30 + $0x38] sm:$0x10] %vm1189_vm14, %v3635_v19  ;;  %v2283_v23 = vsel %vm660_vm4, %v2282_v18, %v2281_v15  ;;  %v2286_v24 = vrot.slane %v3635_v19, 1 }
 0xc8b   : > { %v3639_v25 = vpop.eup %3638  ;;  %2270 = vst.msk [vmem:[%s4258_s30 + $0x58] sm:$0x10] %vm1189_vm14, %v3637_v22  ;;  %v2285_v20 = vsel %vm663_vm5, %v2284_v21, %v2283_v23  ;;  %v2289_v46 = vrot.slane %v3637_v22, 7 }
 0xc8c   : > { %v3641_v32 = vpop.eup %3640  ;;  %2271 = vst.msk [vmem:[%s4258_s30 + $0x68] sm:$0x10] %vm1189_vm14, %v3639_v25  ;;  %v2287_v40 = vsel %vm666_vm6, %v2286_v24, %v2285_v20  ;;  %v2291_v59 = vrot.slane %v3639_v25, 6 }
 0xc8d   : > { %2272 = vst.msk [vmem:[%s4258_s30 + $0x78] sm:$0x10] %vm1189_vm14, %v3641_v32  ;;  %v2288_v52 = vsel %vm669_vm7, %v3627_v10, %v2287_v40  ;;  %v2293_v13 = vrot.slane %v3641_v32, 5 }
 0xc8e   : > { %v2290_v4 = vsel %vm672_vm8, %v2289_v46, %v2288_v52 }
 0xc8f   : > { %v2292_v26 = vsel %vm675_vm9, %v2291_v59, %v2290_v4 }
 0xc90   : > { %v2294_v27 = vsel %vm678_vm10, %v2293_v13, %v2292_v26 }
 0xc91   : > { %3215 = vmatmul.mubr.msk.f32.vlgmr.msra.gmra.mrb[16].mxu1 %vm310_vm1, %v2294_v27 }
 0xc92   : > { %3335 = vmatpush3.bf16.msra.mxu1 %v4157_v8  ;;  %3236 = vmatprep.mubr.msk.f32.mxu1 %vm3902_vm0, %v3903_v1  ;;  %vm4988_vm0 = vcmask 260102  }
 0xc93   : > { %3336 = vmatprep.subr.bf16.mxu1 %v3901_v0  ;;  %vm4989_vm3 = vmmov %vm4988_vm0 }
 0xc94   : > { %vm4990_vm11 = vmmov %vm4988_vm0 }
 0xc95   : > { %vm4991_vm12 = vmmov %vm4988_vm0 }
 0xc96   : > { %3338 = vmatpush3.bf16.msra.mxu1 %v4162_v12  ;;  %vm4992_vm13 = vmmov %vm4988_vm0 }
 0xc97   : > { %vm4993_vm14 = vmmov %vm4988_vm0 }
 0xd64   : > { %v2363_v28 = vpop.f32.mrb[16].mxu1 }
 0xd65   : > { %v2368_v29 = vrot.slane %v2363_v28, 3  ;;  %v2369_v31 = vrot.slane %v2363_v28, 4  ;;  %v2370_v33 = vrot.slane %v2363_v28, 5  ;;  %v2371_v34 = vrot.slane %v2363_v28, 6  ;;  %v3216_v35 = vpop.f32.mrb[17].mxu1 }
 0xd66   : > { %v2372_v36 = vrot.slane %v2363_v28, 7  ;;  %v2373_v37 = vrot.slane %v2363_v28, 1  ;;  %v2388_v38 = vadd.f32 %v2363_v28, %v4265_v2  ;;  %v2374_v41 = vrot.slane %v2363_v28, 2 }
 0xd67   : > { %v2383_v8 = vadd.f32 %v2368_v29, %v4216_v30  ;;  %v2384_v42 = vadd.f32 %v2369_v31, %v4227_v39  ;;  %v2385_v0 = vadd.f32 %v2370_v33, %v4235_v44  ;;  %v2386_v1 = vadd.f32 %v2371_v34, %v4243_v50 }
 0xd68   : > { %3642 = vtanh.f32 %v2388_v38  ;;  %v2387_v12 = vadd.f32 %v2372_v36, %v4251_v56  ;;  %v2389_v43 = vadd.f32 %v2373_v37, %v4274_v9  ;;  %v2390_v45 = vadd.f32 %v2374_v41, %v4284_v17 }
 0xd69   : > { %3644 = vtanh.f32 %v2383_v8 }
 0xd6a   : > { %3646 = vtanh.f32 %v2384_v42 }
 0xd6b   : > { %3648 = vtanh.f32 %v2385_v0 }
 0xd6c   : > { %3650 = vtanh.f32 %v2386_v1 }
 0xd6d   : > { %3652 = vtanh.f32 %v2387_v12 }
 0xd6e   : > { %3654 = vtanh.f32 %v2389_v43 }
 0xd6f   : > { %3656 = vtanh.f32 %v2390_v45 }
 0xd72   : > { %v3643_v47 = vpop.eup %3642 }
 0xd73   : > { %v3645_v48 = vpop.eup %3644  ;;  %2404 = vst.msk [vmem:[%s4258_s30 + $0x58] sm:$0x20] %vm1324_vm15, %v3643_v47 }
 0xd74   : > { %v3647_v49 = vpop.eup %3646  ;;  %2399 = vst.msk [vmem:[%s4258_s30 + $0x8] sm:$0x20] %vm1324_vm15, %v3645_v48  ;;  %v2415_v51 = vrot.slane %v3645_v48, 5 }
 0xd75   : > { %v3649_v53 = vpop.eup %3648  ;;  %2400 = vst.msk [vmem:[%s4258_s30 + $0x18] sm:$0x20] %vm1324_vm15, %v3647_v49  ;;  %v2416_v54 = vrot.slane %v3647_v49, 4 }
 0xd76   : > { %v3651_v55 = vpop.eup %3650  ;;  %2401 = vst.msk [vmem:[%s4258_s30 + $0x28] sm:$0x20] %vm1324_vm15, %v3649_v53  ;;  %v2418_v57 = vrot.slane %v3649_v53, 3 }
 0xd77   : > { %v3653_v58 = vpop.eup %3652  ;;  %2402 = vst.msk [vmem:[%s4258_s30 + $0x38] sm:$0x20] %vm1324_vm15, %v3651_v55  ;;  %v2417_v60 = vsel %vm660_vm4, %v2416_v54, %v2415_v51  ;;  %v2420_v61 = vrot.slane %v3651_v55, 2 }
 0xd78   : > { %v3655_v62 = vpop.eup %3654  ;;  %2403 = vst.msk [vmem:[%s4258_s30 + $0x48] sm:$0x20] %vm1324_vm15, %v3653_v58  ;;  %v2419_v63 = vsel %vm663_vm5, %v2418_v57, %v2417_v60  ;;  %v2422_v3 = vrot.slane %v3653_v58, 1 }
 0xd79   : > { %v3657_v5 = vpop.eup %3656  ;;  %2405 = vst.msk [vmem:[%s4258_s30 + $0x68] sm:$0x20] %vm1324_vm15, %v3655_v62  ;;  %v2421_v6 = vsel %vm666_vm6, %v2420_v61, %v2419_v63  ;;  %v2425_v10 = vrot.slane %v3655_v62, 7 }
 0xd7a   : > { %2406 = vst.msk [vmem:[%s4258_s30 + $0x78] sm:$0x20] %vm1324_vm15, %v3657_v5  ;;  %v2423_v7 = vsel %vm669_vm7, %v2422_v3, %v2421_v6  ;;  %v2427_v14 = vrot.slane %v3657_v5, 6  ;;  %vm4994_vm15 = vmmov %vm4988_vm0 }
 0xd7b   : > { %v2424_v11 = vsel %vm672_vm8, %v3643_v47, %v2423_v7 }
 0xd7c   : > { %v2426_v15 = vsel %vm675_vm9, %v2425_v10, %v2424_v11 }
 0xd7d   : > { %v2428_v16 = vsel %vm678_vm10, %v2427_v14, %v2426_v15 }
 0xd7e   : > { %3226 = vmatmul.mubr.msk.f32.vlgmr.msra.gmra.mrb[26].mxu0 %vm310_vm1, %v2428_v16 }
 0xe51   : > { %v2497_v18 = vpop.f32.mrb[26].mxu0 }
 0xe52   : > { %v2502_v19 = vrot.slane %v2497_v18, 2  ;;  %v2503_v21 = vrot.slane %v2497_v18, 3  ;;  %v2504_v22 = vrot.slane %v2497_v18, 4  ;;  %v2505_v23 = vrot.slane %v2497_v18, 5  ;;  %v3227_v24 = vpop.f32.mrb[27].mxu0 }
 0xe53   : > { %v2506_v25 = vrot.slane %v2497_v18, 6  ;;  %v2507_v20 = vrot.slane %v2497_v18, 7  ;;  %v2523_v32 = vadd.f32 %v2497_v18, %v4274_v9  ;;  %v2508_v40 = vrot.slane %v2497_v18, 1 }
 0xe54   : > { %v2517_v46 = vadd.f32 %v2502_v19, %v4216_v30  ;;  %v2518_v52 = vadd.f32 %v2503_v21, %v4227_v39  ;;  %v2519_v59 = vadd.f32 %v2504_v22, %v4235_v44  ;;  %v2520_v4 = vadd.f32 %v2505_v23, %v4243_v50 }
 0xe55   : > { %3658 = vtanh.f32 %v2523_v32  ;;  %v2521_v13 = vadd.f32 %v2506_v25, %v4251_v56  ;;  %v2522_v26 = vadd.f32 %v2507_v20, %v4265_v2  ;;  %v2524_v27 = vadd.f32 %v2508_v40, %v4284_v17 }
 0xe56   : > { %3660 = vtanh.f32 %v2517_v46 }
 0xe57   : > { %3662 = vtanh.f32 %v2518_v52 }
 0xe58   : > { %3664 = vtanh.f32 %v2519_v59 }
 0xe59   : > { %3666 = vtanh.f32 %v2520_v4 }
 0xe5a   : > { %3668 = vtanh.f32 %v2521_v13 }
 0xe5b   : > { %3670 = vtanh.f32 %v2522_v26 }
 0xe5c   : > { %3672 = vtanh.f32 %v2524_v27 }
 0xe5f   : > { %v3659_v28 = vpop.eup %3658 }
 0xe60   : > { %v3661_v29 = vpop.eup %3660  ;;  %2539 = vst.msk [vmem:[%s4258_s30 + $0x68] sm:$0x40] %vm4988_vm0, %v3659_v28 }
 0xe61   : > { %v3663_v31 = vpop.eup %3662  ;;  %2533 = vst.msk [vmem:[%s4258_s30 + $0x8] sm:$0x40] %vm4989_vm3, %v3661_v29  ;;  %v2549_v33 = vrot.slane %v3661_v29, 6 }
 0xe62   : > { %v3665_v34 = vpop.eup %3664  ;;  %2534 = vst.msk [vmem:[%s4258_s30 + $0x18] sm:$0x40] %vm4990_vm11, %v3663_v31  ;;  %v2550_v35 = vrot.slane %v3663_v31, 5 }
 0xe63   : > { %v3667_v36 = vpop.eup %3666  ;;  %2535 = vst.msk [vmem:[%s4258_s30 + $0x28] sm:$0x40] %vm4991_vm12, %v3665_v34  ;;  %v2552_v37 = vrot.slane %v3665_v34, 4 }
 0xe64   : > { %v3669_v38 = vpop.eup %3668  ;;  %2536 = vst.msk [vmem:[%s4258_s30 + $0x38] sm:$0x40] %vm4992_vm13, %v3667_v36  ;;  %v2551_v41 = vsel %vm660_vm4, %v2550_v35, %v2549_v33  ;;  %v2554_v8 = vrot.slane %v3667_v36, 3 }
 0xe65   : > { %v3671_v42 = vpop.eup %3670  ;;  %2537 = vst.msk [vmem:[%s4258_s30 + $0x48] sm:$0x40] %vm4993_vm14, %v3669_v38  ;;  %v2553_v0 = vsel %vm663_vm5, %v2552_v37, %v2551_v41  ;;  %v2556_v1 = vrot.slane %v3669_v38, 2 }
 0xe66   : > { %v3673_v12 = vpop.eup %3672  ;;  %2538 = vst.msk [vmem:[%s4258_s30 + $0x58] sm:$0x40] %vm4994_vm15, %v3671_v42  ;;  %v2555_v43 = vsel %vm666_vm6, %v2554_v8, %v2553_v0  ;;  %v2558_v45 = vrot.slane %v3671_v42, 1 }
 0xe67   : > { %2540 = vst.msk [vmem:[%s4258_s30 + $0x78] sm:$0x40] %vm4988_vm0, %v3673_v12  ;;  %v2557_v47 = vsel %vm669_vm7, %v2556_v1, %v2555_v43  ;;  %v2561_v49 = vrot.slane %v3673_v12, 7 }
 0xe68   : > { %v2559_v48 = vsel %vm672_vm8, %v2558_v45, %v2557_v47 }
 0xe69   : > { %v2560_v51 = vsel %vm675_vm9, %v3659_v28, %v2559_v48 }
 0xe6a   : > { %v2562_v53 = vsel %vm678_vm10, %v2561_v49, %v2560_v51 }
 0xe6b   : > { %3237 = vmatmul.mubr.msk.f32.vlgmr.msra.gmra.mrb[18].mxu1 %vm310_vm1, %v2562_v53 }
 0xf3e   : > { %v2631_v54 = vpop.f32.mrb[18].mxu1 }
 0xf3f   : > { %v2636_v55 = vrot.slane %v2631_v54, 1  ;;  %v2637_v57 = vrot.slane %v2631_v54, 2  ;;  %v2638_v58 = vrot.slane %v2631_v54, 3  ;;  %v2639_v60 = vrot.slane %v2631_v54, 4  ;;  %v3238_v61 = vpop.f32.mrb[19].mxu1 }
 0xf40   : > { %v2640_v62 = vrot.slane %v2631_v54, 5  ;;  %v2641_v63 = vrot.slane %v2631_v54, 6  ;;  %v2658_v3 = vadd.f32 %v2631_v54, %v4284_v17  ;;  %v2642_v5 = vrot.slane %v2631_v54, 7 }
 0xf41   : > { %v2651_v6 = vadd.f32 %v2636_v55, %v4216_v30  ;;  %v2652_v7 = vadd.f32 %v2637_v57, %v4227_v39  ;;  %v2653_v10 = vadd.f32 %v2638_v58, %v4235_v44  ;;  %v2654_v11 = vadd.f32 %v2639_v60, %v4243_v50 }
 0xf42   : > { %3674 = vtanh.f32 %v2658_v3  ;;  %v2655_v14 = vadd.f32 %v2640_v62, %v4251_v56  ;;  %v2656_v15 = vadd.f32 %v2641_v63, %v4265_v2  ;;  %v2657_v17 = vadd.f32 %v2642_v5, %v4274_v9 }
 0xf43   : > { %3676 = vtanh.f32 %v2651_v6 }
 0xf44   : > { %3678 = vtanh.f32 %v2652_v7 }
 0xf45   : > { %3680 = vtanh.f32 %v2653_v10 }
 0xf46   : > { %3682 = vtanh.f32 %v2654_v11 }
 0xf47   : > { %3684 = vtanh.f32 %v2655_v14 }
 0xf48   : > { %3686 = vtanh.f32 %v2656_v15 }
 0xf49   : > { %3688 = vtanh.f32 %v2657_v17 }
 0xf4c   : > { %v4842_v30 = vpop.eup %3674 }
 0xf4d   : > { %v3677_v39 = vpop.eup %3676  ;;  %2674 = vst.msk [vmem:[%s4258_s30 + $0x78] sm:$0x80] %vm1594_vm2, %v4842_v30 }
 0xf4e   : > { %v3679_v44 = vpop.eup %3678  ;;  %2667 = vst.msk [vmem:[%s4258_s30 + $0x8] sm:$0x80] %vm1594_vm2, %v3677_v39  ;;  %2698 = vst.msk [vmem:[#allocation2 - $0x7] sm:$0x80] %vm1594_vm2, %v3677_v39 }
 0xf4f   : > { %2701 = vst.msk [vmem:[%s4852_s12 - $0x7] sm:$0x80] %vm1594_vm2, %v3677_v39  ;;  %v3681_v50 = vpop.eup %3680  ;;  %2668 = vst.msk [vmem:[%s4258_s30 + $0x18] sm:$0x80] %vm1594_vm2, %v3679_v44  ;;  %v2683_v56 = vrot.slane %v3679_v44, 7 }
 0xf50   : > { %v3683_v2 = vpop.eup %3682  ;;  %2669 = vst.msk [vmem:[%s4258_s30 + $0x28] sm:$0x80] %vm1594_vm2, %v3681_v50  ;;  %v2684_v9 = vrot.slane %v3681_v50, 6 }
 0xf51   : > { %v3685_v16 = vpop.eup %3684  ;;  %2670 = vst.msk [vmem:[%s4258_s30 + $0x38] sm:$0x80] %vm1594_vm2, %v3683_v2  ;;  %v2686_v18 = vrot.slane %v3683_v2, 5 }
 0xf52   : > { %v3687_v19 = vpop.eup %3686  ;;  %2671 = vst.msk [vmem:[%s4258_s30 + $0x48] sm:$0x80] %vm1594_vm2, %v3685_v16  ;;  %v2685_v21 = vsel %vm660_vm4, %v2684_v9, %v2683_v56  ;;  %v2688_v22 = vrot.slane %v3685_v16, 4 }
 0xf53   : > { %v3689_v23 = vpop.eup %3688  ;;  %2672 = vst.msk [vmem:[%s4258_s30 + $0x58] sm:$0x80] %vm1594_vm2, %v3687_v19  ;;  %v2687_v24 = vsel %vm663_vm5, %v2686_v18, %v2685_v21  ;;  %v2690_v25 = vrot.slane %v3687_v19, 3 }
 0xf54   : > { %2673 = vst.msk [vmem:[%s4258_s30 + $0x68] sm:$0x80] %vm1594_vm2, %v3689_v23  ;;  %v2689_v20 = vsel %vm666_vm6, %v2688_v22, %v2687_v24  ;;  %v2692_v32 = vrot.slane %v3689_v23, 2 }
 0xf55   : > { %3789 = shalt.err (!%p3786_p11)
}
 0xf56   : > { %s3790_s30 = scalar_lea.hbm %s4865_s7, 2048  ;;  %s3794_s16 = scalar_lea.hbm %s4969_s4, 4096 }
 0xf57   : > { %p3791_p0 = scmp.ne.s32.totalorder %s4865_s7, %s3790_s30  ;;  %p3795_p6 = scmp.lt.u32.totalorder %s4865_s7, %s4969_s4 }
 0xf58   : > { %p3796_p7 = scmp.lt.u32.totalorder %s3794_s16, %s3790_s30  ;;  %p3798_p8 = scmp.lt.u32.totalorder %s3790_s30, %s4865_s7 }
 0xf59   : > { %p3792_p4 = pnand %p3791_p0, %p4995_p12 }
 0xf5a   : > { %p3797_p2 = por %p3796_p7, %p3795_p6 }
 0xf5b   : > { %p3793_p13 = pneg %p3792_p4 }
 0xf5c   : > { %p3799_p1 = por %p3798_p8, %p3797_p2 }
 0xf5e   : > { %p3800_p10 = pnand %p3799_p1, %p3793_p13 }
 0xf60   : > { %3803 = shalt.err (!%p3800_p10)
}
 0xf61   : > { %s3905_s25 = smov 128   ;;  %s3906_s6 = smov 8   ;;  %v2691_v40 = vsel %vm669_vm7, %v2690_v25, %v2689_v20  ;;  %v2694_v46 = vrot.slane %v4842_v30, 1  ;;  %vm2699_vm1 = vcmask 260096  }
 0xf62   : > { %3349 = dma.vmem_to_hbm [thread:$0]  (%p4995_p12), %s4867_s11, 2048, %s4865_s7, %s2704_s15, %s3905_s25, %s3905_s25, %s3906_s6   ;;  %v2693_v52 = vsel %vm672_vm8, %v2692_v32, %v2691_v40 }
 0xf63   : > { %s4912_s10 = scalar_lea.hbm %s4970_s5, %s2930_s14  ;;  %v2695_v59 = vsel %vm675_vm9, %v2694_v46, %v2693_v52  ;;  %s2709_s11 = scalar_lea.sflag [#allocation11], %s4135_s24 }
 0xf64   : > { %2700 = vst.msk [vmem:[#allocation2 + $0x1] sm:$0x7f] %vm2699_vm1, %v2695_v59  ;;  %2702 = vst.msk [vmem:[%s4852_s12 + $0x1] sm:$0x7f] %vm2699_vm1, %v2695_v59  ;;  %s3804_s7 = scalar_lea.vmem %s4916_s27, 128  ;;  %s3907_s21 = smov [#allocation10]  }
 0xf65   : > { %p3805_p3 = scmp.ne.s32.totalorder %s4916_s27, %s3804_s7  ;;  %s3808_s15 = sshll.u32 %s3907_s21, 4  ;;  %s3809_s15 = int_to_ptr.vmem [resolvable:$false] %s3808_s15 }
 0xf66   : > { %s3810_s14 = scalar_lea.vmem %s3809_s15, 256  ;;  %p3811_p11 = scmp.lt.s32.totalorder %s4916_s27, %s3809_s15 }
 0xf67   : > { %p3806_p5 = pnand %p3805_p3, %p4995_p12  ;;  %p3812_p0 = scmp.lt.s32.totalorder %s3810_s14, %s3804_s7 }
 0xf69   : > { %p3807_p9 = pneg %p3806_p5  ;;  %p3813_p4 = por %p3812_p0, %p3811_p11 }
 0xf6b   : > { %p3814_p13 = pnand %p3813_p4, %p3807_p9 }
 0xf6d   : > { %3817 = shalt.err (!%p3814_p13)
}
 0xf6e   : > { %s3818_s24 = scalar_lea.hbm %s4912_s10, 128  ;;  %s3822_s26 = scalar_lea.hbm %s4970_s5, 256 }
 0xf6f   : > { %p3819_p6 = scmp.ne.s32.totalorder %s4912_s10, %s3818_s24  ;;  %p3823_p8 = scmp.lt.u32.totalorder %s4912_s10, %s4970_s5 }
 0xf70   : > { %p3824_p1 = scmp.lt.u32.totalorder %s3822_s26, %s3818_s24  ;;  %p3826_p3 = scmp.lt.u32.totalorder %s3818_s24, %s4912_s10 }
 0xf71   : > { %p3820_p7 = pnand %p3819_p6, %p4995_p12 }
 0xf72   : > { %p3825_p10 = por %p3824_p1, %p3823_p8 }
 0xf73   : > { %p3821_p2 = pneg %p3820_p7 }
 0xf74   : > { %p3827_p5 = por %p3826_p3, %p3825_p10 }
 0xf76   : > { %p3828_p9 = pnand %p3827_p5, %p3821_p2 }
 0xf78   : > { %3831 = shalt.err (!%p3828_p9)
}
 0xf79   : > { %3350 = dma.vmem_to_hbm [thread:$0]  (%p4995_p12), %s4916_s27, 128, %s4912_s10, %s2709_s11  }
 0xf7a PF: > { %s2753_s6 = sand.u32 1, %s3874_s18   ;;  %p4996_p11 = scmp.ne.s32.totalorder %s4980_s29, 0 }
 0xf7b   : > { %p4997_p0 = scmp.ge.s32.totalorder %s3894_s23, 2  ;;  %s2754_s30 = scalar_lea.sflag [#allocation5], %s2753_s6 }
 0xf7d   : > { %p3365_p4 = pnand %p4997_p0, %p4996_p11 }
 0xf7f   : > { %3865 = dma.done.wait (!%p3365_p4), %s2754_s30, 2048  }
 0xf80   : > { %3867 = vsyncadd (!%p3365_p4), %s2754_s30, 4294965248  ;;  %s2763_s9 = scalar_lea.sflag [#allocation11], %s2753_s6 }
 0xf81   : > { %3869 = dma.done.wait (!%p3365_p4), %s2763_s9, 128  }
 0xf82   : > { %3871 = vsyncadd (!%p3365_p4), %s2763_s9, 4294967168  ;;  %s26_s23 = sadd.s32 1, %s3894_s23   ;;  %s4998_s18 = smov %s3878_s19 }
 0xf83   : > { %p23_p13 = scmp.ge.s32.totalorder %s26_s23, 4   ;;  %s4999_s19 = smov %s3882_s20 }
 0xf84   : > { %s5000_s20 = smov %s4086_s17  ;;  %s5001_s21 = smov %s3890_s22 }
 0xf85   : > { %s5002_s22 = smov %s5004_s8  ;;  %25 = sbr.rel (!%p23_p13) target bundleno = 9 (0x9), region = 110 }
 0xf8c   :  { %2768 = vsyncpa [#allocation4], 1 }
 0xf8d   :  { %2770 = vsyncpa [#allocation4 + $0x1], 1 }
 0xf8e   :  { %2771 = vsyncpa [#allocation7], 1 }
 0xf8f   :  { %2772 = vsyncpa [#allocation5], 1 }
 0xf90   :  { %2774 = vsyncpa [#allocation5 + $0x1], 1 }
 0xf91   :  { %2775 = vsyncpa [#allocation11], 1 }
 0xf92   :  { %2777 = vsyncpa [#allocation11 + $0x1], 1 }

</bundles_post_ra>
